<compile_context>
chip_gen: v7x
topology: tpu7x:2x2x1
jax: 0.10.0
libtpu: 0.0.40
codegen_flags: <defaults>
</compile_context>

<pallas_src>
import functools
import math

import jax
import jax.numpy as jnp
from jax import lax
from jax.experimental import pallas as pl
from jax.experimental.pallas import tpu as pltpu


# ----------------------------------------------------------------------------
# Tiling helpers.  Blocks keep their last-two dims either (8,128)-aligned or
# equal to the full array dims (fallback), so BlockSpecs are always legal.
# ----------------------------------------------------------------------------
def _row_tile(dim, pref):
    """Sublane-dim tile: multiple of 8 dividing dim (falls back to full dim)."""
    if dim <= pref or dim % 8 != 0:
        return dim
    t = (pref // 8) * 8
    while t >= 8:
        if dim % t == 0:
            return t
        t -= 8
    return dim


def _lane_tile(dim, pref):
    """Lane-dim tile: multiple of 128 dividing dim (falls back to full dim)."""
    if dim <= pref or dim % 128 != 0:
        return dim
    t = (pref // 128) * 128
    while t >= 128:
        if dim % t == 0:
            return t
        t -= 128
    return dim


@functools.lru_cache(maxsize=1)
def _vmem_limit_bytes():
    """~3/4 of per-core VMEM (v7x: 48 MiB of 64; v5e/v6e: 96 MiB of 128)."""
    try:
        cap = int(pltpu.get_tpu_info().vmem_capacity_bytes)
        return int(min(max((cap * 3) // 4, 32 * 1024 * 1024), 96 * 1024 * 1024))
    except Exception:
        return 48 * 1024 * 1024


def _heads_per_group(num_heads, head_dim):
    """Smallest head-group whose lane width is a 128-multiple (else all heads,
    i.e. the full-E block, which is always a legal lane width)."""
    for g in range(1, num_heads + 1):
        if num_heads % g == 0 and (g * head_dim) % 128 == 0:
            return g
    return num_heads


# ----------------------------------------------------------------------------
# Kernel 1: tiled matmul + bias (+ optional ReLU).  bf16 MXU operands, f32 acc.
# Used for the conv1 (E -> hidden) pointwise projection.
# ----------------------------------------------------------------------------
def _matmul_bias_kernel(x_ref, w_ref, b_ref, o_ref, acc_ref, *, activation):
    @pl.when(pl.program_id(2) == 0)
    def _():
        acc_ref[...] = jnp.zeros_like(acc_ref)

    acc_ref[...] += jnp.dot(x_ref[...].astype(jnp.bfloat16),
                            w_ref[...].astype(jnp.bfloat16),
                            preferred_element_type=jnp.float32)

    @pl.when(pl.program_id(2) == pl.num_programs(2) - 1)
    def _():
        acc = acc_ref[...] + b_ref[...].astype(jnp.float32)   # (1, tn) broadcasts
        if activation == "relu":
            acc = jnp.maximum(acc, 0.0)
        o_ref[...] = acc.astype(o_ref.dtype)


def pallas_matmul_bias(x2d, w, b, activation=None, *, out_dtype=None,
                       tm_pref=512, tn_pref=512, tk_pref=512):
    M, K = x2d.shape
    K2, N = w.shape
    assert K == K2
    out_dtype = out_dtype if out_dtype is not None else x2d.dtype
    tm = _row_tile(M, tm_pref)
    tn = _lane_tile(N, tn_pref)
    tk = _lane_tile(K, tk_pref)
    b2d = b.reshape(1, N)
    kernel = functools.partial(_matmul_bias_kernel, activation=activation)
    return pl.pallas_call(
        kernel,
        out_shape=jax.ShapeDtypeStruct((M, N), out_dtype),
        grid=(M // tm, N // tn, K // tk),
        in_specs=[
            pl.BlockSpec((tm, tk), lambda i, j, k: (i, k)),
            pl.BlockSpec((tk, tn), lambda i, j, k: (k, j)),
            pl.BlockSpec((1, tn), lambda i, j, k: (0, j)),
        ],
        out_specs=pl.BlockSpec((tm, tn), lambda i, j, k: (i, j)),
        scratch_shapes=[pltpu.VMEM((tm, tn), jnp.float32)],
        compiler_params=pltpu.CompilerParams(
            dimension_semantics=("parallel", "parallel", "arbitrary"),
            vmem_limit_bytes=_vmem_limit_bytes()),
    )(x2d, w, b2d)


# ----------------------------------------------------------------------------
# Kernel 2: fused q/k/v projection writing a PACKED (3, M, E) output.
# Weights arrive stacked as (3, E, E); the grid has an explicit size-3 axis so
# no strided slicing of the fused projection is ever needed downstream.
# ----------------------------------------------------------------------------
def _qkv_proj_kernel(x_ref, w_ref, b_ref, o_ref, acc_ref):
    @pl.when(pl.program_id(3) == 0)
    def _():
        acc_ref[...] = jnp.zeros_like(acc_ref)

    acc_ref[...] += jnp.dot(x_ref[...].astype(jnp.bfloat16),
                            w_ref[0].astype(jnp.bfloat16),
                            preferred_element_type=jnp.float32)

    @pl.when(pl.program_id(3) == pl.num_programs(3) - 1)
    def _():
        o_ref[0] = (acc_ref[...] + b_ref[0].astype(jnp.float32)).astype(o_ref.dtype)


def pallas_qkv_projection(x2d, w3, b3, *, out_dtype=jnp.bfloat16,
                          tm_pref=512, tn_pref=512, tk_pref=512):
    M, K = x2d.shape
    three, K2, E = w3.shape
    assert three == 3 and K == K2
    tm = _row_tile(M, tm_pref)
    tn = _lane_tile(E, tn_pref)
    tk = _lane_tile(K, tk_pref)
    b3r = b3.reshape(3, 1, E)
    return pl.pallas_call(
        _qkv_proj_kernel,
        out_shape=jax.ShapeDtypeStruct((3, M, E), out_dtype),
        grid=(M // tm, 3, E // tn, K // tk),
        in_specs=[
            pl.BlockSpec((tm, tk), lambda i, q, j, k: (i, k)),
            pl.BlockSpec((1, tk, tn), lambda i, q, j, k: (q, k, j)),
            pl.BlockSpec((1, 1, tn), lambda i, q, j, k: (q, 0, j)),
        ],
        out_specs=pl.BlockSpec((1, tm, tn), lambda i, q, j, k: (q, i, j)),
        scratch_shapes=[pltpu.VMEM((tm, tn), jnp.float32)],
        compiler_params=pltpu.CompilerParams(
            dimension_semantics=("parallel", "parallel", "parallel", "arbitrary"),
            vmem_limit_bytes=_vmem_limit_bytes()),
    )(x2d, w3, b3r)


# ----------------------------------------------------------------------------
# Kernel 3: attention over (batch, head-group, q-row tile).
#   * causal + key-padding bias built in-kernel from a (B,1,S) int mask
#   * q pre-scaled (1/sqrt(Dh) folded into wq at prepare time)
#   * bf16 QK^T / PV operands, f32 accumulate, softmax math in f32
#   * exact softmax division so the returned filters match the module
#   * context written per-head directly into the (B,S,E)-layout output block
# ----------------------------------------------------------------------------
def _attention_kernel(mask_ref, q_ref, k_ref, v_ref, o_ref, attn_ref, *,
                      causal, heads_per_group, head_dim):
    tq = q_ref.shape[2]
    S = k_ref.shape[2]
    qt = pl.program_id(2)

    # Additive mask bias (shared by all heads of the group), never stored in HBM.
    keep = mask_ref[0] > 0                                        # (1, S)
    if causal:
        row = lax.broadcasted_iota(jnp.int32, (tq, S), 0) + qt * tq
        col = lax.broadcasted_iota(jnp.int32, (tq, S), 1)
        keep = jnp.logical_and(keep, col <= row)                  # (tq, S)
    bias = jnp.where(keep, 0.0, -1e9).astype(jnp.float32)

    q = q_ref[0, 0]                                               # (tq, G*Dh) bf16
    k = k_ref[0, 0]                                               # (S,  G*Dh) bf16
    v = v_ref[0, 0]                                               # (S,  G*Dh) bf16

    for g in range(heads_per_group):                              # small static unroll
        sl = slice(g * head_dim, (g + 1) * head_dim)
        s = lax.dot_general(q[:, sl], k[:, sl], (((1,), (1,)), ((), ())),
                            preferred_element_type=jnp.float32)   # (tq, S) f32
        s = s + bias
        m = jnp.max(s, axis=-1, keepdims=True)
        p = jnp.exp(s - m)
        p = p / jnp.sum(p, axis=-1, keepdims=True)                # exact softmax
        attn_ref[0, g] = p.astype(attn_ref.dtype)
        ctx = jnp.dot(p.astype(v.dtype), v[:, sl],
                      preferred_element_type=jnp.float32)         # (tq, Dh) f32
        o_ref[0, :, sl] = ctx.astype(o_ref.dtype)


def pallas_attention(qkv, attention_mask, *, num_heads, causal,
                     filters_dtype=jnp.float32):
    """qkv: packed (3, B, S, E); attention_mask: (B, S) int (1=token, 0=pad)."""
    _, B, S, E = qkv.shape
    assert E % num_heads == 0
    Dh = E // num_heads
    G = _heads_per_group(num_heads, Dh)
    GDh = G * Dh
    n_hg = num_heads // G
    tq = _row_tile(S, 256)
    mask3d = attention_mask.astype(jnp.int32).reshape(B, 1, S)
    kernel = functools.partial(_attention_kernel, causal=causal,
                               heads_per_group=G, head_dim=Dh)
    return pl.pallas_call(
        kernel,
        out_shape=(
            jax.ShapeDtypeStruct((B, S, E), qkv.dtype),
            jax.ShapeDtypeStruct((B, num_heads, S, S), filters_dtype),
        ),
        grid=(B, n_hg, S // tq),
        in_specs=[
            pl.BlockSpec((1, 1, S), lambda b, hg, qt: (b, 0, 0)),          # mask
            pl.BlockSpec((1, 1, tq, GDh), lambda b, hg, qt: (0, b, qt, hg)),  # q
            pl.BlockSpec((1, 1, S, GDh), lambda b, hg, qt: (1, b, 0, hg)),    # k
            pl.BlockSpec((1, 1, S, GDh), lambda b, hg, qt: (2, b, 0, hg)),    # v
        ],
        out_specs=(
            pl.BlockSpec((1, tq, GDh), lambda b, hg, qt: (b, qt, hg)),
            pl.BlockSpec((1, G, tq, S), lambda b, hg, qt: (b, hg, qt, 0)),
        ),
        compiler_params=pltpu.CompilerParams(
            dimension_semantics=("parallel", "parallel", "parallel"),
            vmem_limit_bytes=_vmem_limit_bytes()),
    )(mask3d, qkv, qkv, qkv)


# ----------------------------------------------------------------------------
# Kernel 4: tiled matmul + bias with residual-add + LayerNorm fused into the
# epilogue (tn = N = E, so the full row is available for the reduction).
# Replaces the two standalone residual+LN passes.
# ----------------------------------------------------------------------------
def _matmul_bias_ln_kernel(x_ref, w_ref, b_ref, res_ref, g_ref, beta_ref,
                           o_ref, acc_ref, *, eps):
    @pl.when(pl.program_id(1) == 0)
    def _():
        acc_ref[...] = jnp.zeros_like(acc_ref)

    acc_ref[...] += jnp.dot(x_ref[...].astype(jnp.bfloat16),
                            w_ref[...].astype(jnp.bfloat16),
                            preferred_element_type=jnp.float32)

    @pl.when(pl.program_id(1) == pl.num_programs(1) - 1)
    def _():
        y = (acc_ref[...] + b_ref[...].astype(jnp.float32)
             + res_ref[...].astype(jnp.float32))
        mu = jnp.mean(y, axis=-1, keepdims=True)
        var = jnp.maximum(jnp.mean(y * y, axis=-1, keepdims=True) - mu * mu, 0.0)
        xhat = (y - mu) * lax.rsqrt(var + eps)
        o_ref[...] = (xhat * g_ref[...].astype(jnp.float32)
                      + beta_ref[...].astype(jnp.float32)).astype(o_ref.dtype)


def pallas_matmul_bias_ln_residual(x2d, w, b, res2d, gamma, beta, *, eps=1e-5,
                                   out_dtype=jnp.float32, tm_pref=256, tk_pref=512):
    M, K = x2d.shape
    K2, N = w.shape
    assert K == K2 and res2d.shape == (M, N)
    tm = _row_tile(M, tm_pref)
    tk = _lane_tile(K, tk_pref)
    b2d = b.reshape(1, N)
    g2d = gamma.reshape(1, N)
    be2d = beta.reshape(1, N)
    kernel = functools.partial(_matmul_bias_ln_kernel, eps=eps)
    return pl.pallas_call(
        kernel,
        out_shape=jax.ShapeDtypeStruct((M, N), out_dtype),
        grid=(M // tm, K // tk),
        in_specs=[
            pl.BlockSpec((tm, tk), lambda i, k: (i, k)),
            pl.BlockSpec((tk, N), lambda i, k: (k, 0)),
            pl.BlockSpec((1, N), lambda i, k: (0, 0)),
            pl.BlockSpec((tm, N), lambda i, k: (i, 0)),
            pl.BlockSpec((1, N), lambda i, k: (0, 0)),
            pl.BlockSpec((1, N), lambda i, k: (0, 0)),
        ],
        out_specs=pl.BlockSpec((tm, N), lambda i, k: (i, 0)),
        scratch_shapes=[pltpu.VMEM((tm, N), jnp.float32)],
        compiler_params=pltpu.CompilerParams(
            dimension_semantics=("parallel", "arbitrary"),
            vmem_limit_bytes=_vmem_limit_bytes()),
    )(x2d, w, b2d, res2d, g2d, be2d)


# ----------------------------------------------------------------------------
# Parameter init (deterministic, synthetic), one-time parameter prep, and the
# full EncoderLayer forward.
# ----------------------------------------------------------------------------
def init_params(key, embedding_dim, hidden_dim):
    ks = jax.random.split(key, 6)
    sc = 0.02

    def lin(k, fan_in, fan_out):
        kw, kb = jax.random.split(k)
        return (sc * jax.random.normal(kw, (fan_in, fan_out), jnp.float32),
                sc * jax.random.normal(kb, (fan_out,), jnp.float32))

    wq, bq = lin(ks[0], embedding_dim, embedding_dim)
    wk, bk = lin(ks[1], embedding_dim, embedding_dim)
    wv, bv = lin(ks[2], embedding_dim, embedding_dim)
    wo, bo = lin(ks[3], embedding_dim, embedding_dim)
    wc1, bc1 = lin(ks[4], embedding_dim, hidden_dim)    # Conv1d(E->H, ksize=1)
    wc2, bc2 = lin(ks[5], hidden_dim, embedding_dim)    # Conv1d(H->E, ksize=1)
    return dict(wq=wq, bq=bq, wk=wk, bk=bk, wv=wv, bv=bv, wo=wo, bo=bo,
                wc1=wc1, bc1=bc1, wc2=wc2, bc2=bc2,
                ln1_g=jnp.ones((embedding_dim,), jnp.float32),
                ln1_b=jnp.zeros((embedding_dim,), jnp.float32),
                ln2_g=jnp.ones((embedding_dim,), jnp.float32),
                ln2_b=jnp.zeros((embedding_dim,), jnp.float32))


def prepare_params(params, num_heads):
    """One-time prep: fold 1/sqrt(Dh) into the q projection, stack q/k/v weights
    as (3, E, E) and cast matmul weights to bf16 (f32 accumulate in-kernel)."""
    E = params["wq"].shape[0]
    scale = 1.0 / math.sqrt(E // num_heads)
    wqkv3 = jnp.stack([params["wq"] * scale, params["wk"], params["wv"]], axis=0)
    bqkv3 = jnp.stack([params["bq"] * scale, params["bk"], params["bv"]], axis=0)
    return dict(
        wqkv3=wqkv3.astype(jnp.bfloat16), bqkv3=bqkv3,
        wo=params["wo"].astype(jnp.bfloat16), bo=params["bo"],
        wc1=params["wc1"].astype(jnp.bfloat16), bc1=params["bc1"],
        wc2=params["wc2"].astype(jnp.bfloat16), bc2=params["bc2"],
        ln1_g=params["ln1_g"], ln1_b=params["ln1_b"],
        ln2_g=params["ln2_g"], ln2_b=params["ln2_b"])


def encoder_layer_forward(params, embeddings, attention_mask, *, num_heads,
                          causal=True, filters_dtype=jnp.float32):
    """embeddings: (B, S, E) f32; attention_mask: (B, S), 1 = token, 0 = pad."""
    B, S, E = embeddings.shape
    assert E % num_heads == 0
    x2d = embeddings.reshape(B * S, E)

    # Fused q/k/v projection -> packed (3, B*S, E) bf16; the scale is already
    # folded into the q weights.  Reshape below is metadata-only (no copy).
    qkv = pallas_qkv_projection(x2d, params["wqkv3"], params["bqkv3"],
                                out_dtype=jnp.bfloat16)
    qkv = qkv.reshape(3, B, S, E)

    ctx, attention_filters = pallas_attention(
        qkv, attention_mask, num_heads=num_heads, causal=causal,
        filters_dtype=filters_dtype)

    # Output projection + residual + LayerNorm fused in one kernel
    # (attention / output dropout are identity at eval).
    mha_out2d = pallas_matmul_bias_ln_residual(
        ctx.reshape(B * S, E), params["wo"], params["bo"], x2d,
        params["ln1_g"], params["ln1_b"], out_dtype=jnp.float32)

    # PositionalConvolution: Conv1d(ksize=1) -> ReLU -> Conv1d(ksize=1) -> res+LN.
    h = pallas_matmul_bias(mha_out2d, params["wc1"], params["bc1"],
                           activation="relu", out_dtype=jnp.bfloat16)
    out2d = pallas_matmul_bias_ln_residual(
        h, params["wc2"], params["bc2"], mha_out2d,
        params["ln2_g"], params["ln2_b"], out_dtype=jnp.float32)

    return out2d.reshape(B, S, E), attention_filters


if __name__ == "__main__":
    num_heads = 2
    embedding_dim = 32
    hidden_dim = 64
    batch = 2
    seq = 8

    key = jax.random.PRNGKey(0)
    k_params, k_emb = jax.random.split(key)
    raw_params = init_params(k_params, embedding_dim, hidden_dim)
    params = prepare_params(raw_params, num_heads)

    embeddings = jax.random.normal(k_emb, (batch, seq, embedding_dim), jnp.float32)
    # padding mask: second example has its last two positions padded
    attention_mask = jnp.ones((batch, seq), jnp.int32).at[1, 6:].set(0)

    fwd = jax.jit(functools.partial(encoder_layer_forward, num_heads=num_heads,
                                    causal=True))
    outputs, attention_filters = fwd(params, embeddings, attention_mask)
    jax.block_until_ready((outputs, attention_filters))

    assert outputs.shape == (batch, seq, embedding_dim)
    assert attention_filters.shape == (batch, num_heads, seq, seq)
    assert bool(jnp.all(jnp.isfinite(outputs)))
    assert bool(jnp.all(jnp.isfinite(attention_filters)))
    print("KERNEL_OK")
</pallas_src>

<mosaic_0001>
module attributes {stable_mosaic.version = 11 : i64} {
  func.func @_qkv_proj_kernel(%arg0: i32, %arg1: i32, %arg2: i32, %arg3: i32, %arg4: memref<16x32xf32, #tpu.memory_space<vmem>>, %arg5: memref<1x32x32xbf16, #tpu.memory_space<vmem>>, %arg6: memref<1x1x32xf32, #tpu.memory_space<vmem>>, %arg7: memref<1x16x32xbf16, #tpu.memory_space<vmem>>, %arg8: memref<16x32xf32, #tpu.memory_space<vmem>>) attributes {dimension_semantics = [#tpu.dimension_semantics<parallel>, #tpu.dimension_semantics<parallel>, #tpu.dimension_semantics<parallel>, #tpu.dimension_semantics<arbitrary>], iteration_bounds = array<i64: 1, 3, 1, 1>, scalar_prefetch = 0 : i64, scratch_operands = 1 : i64, tpu.core_type = #tpu.core_type<tc>, window_params = [{transform_indices = @transform_0, window_bounds = array<i64: 16, 32>}, {transform_indices = @transform_1, window_bounds = array<i64: 1, 32, 32>}, {transform_indices = @transform_2, window_bounds = array<i64: 1, 1, 32>}, {transform_indices = @transform_3, window_bounds = array<i64: 1, 16, 32>}]} {
    %c0_i32 = arith.constant 0 : i32
    %0 = arith.cmpi eq, %arg3, %c0_i32 : i32
    %1 = arith.extui %0 : i1 to i32
    %c0_i32_0 = arith.constant 0 : i32
    %2 = arith.cmpi ne, %1, %c0_i32_0 : i32
    scf.if %2 {
      %cst_11 = arith.constant 0.000000e+00 : f32
      %14 = vector.broadcast %cst_11 : f32 to vector<16x32xf32>
      %c0_12 = arith.constant 0 : index
      %c0_13 = arith.constant 0 : index
      %15 = vector.load %arg8[%c0_12, %c0_13] : memref<16x32xf32, #tpu.memory_space<vmem>>, vector<16x32xf32>
      tpu.vector_store %arg8[%c0_12, %c0_13], %14 {strides = array<i32>} : memref<16x32xf32, #tpu.memory_space<vmem>>, vector<16x32xf32>,
    } else {
    }
    %c0 = arith.constant 0 : index
    %c0_1 = arith.constant 0 : index
    %3 = vector.load %arg8[%c0, %c0_1] : memref<16x32xf32, #tpu.memory_space<vmem>>, vector<16x32xf32>
    %c0_2 = arith.constant 0 : index
    %c0_3 = arith.constant 0 : index
    %4 = vector.load %arg4[%c0_2, %c0_3] : memref<16x32xf32, #tpu.memory_space<vmem>>, vector<16x32xf32>
    %5 = arith.truncf %4 : vector<16x32xf32> to vector<16x32xbf16>
    %c0_4 = arith.constant 0 : index
    %c0_5 = arith.constant 0 : index
    %c0_6 = arith.constant 0 : index
    %6 = vector.load %arg5[%c0_4, %c0_5, %c0_6] : memref<1x32x32xbf16, #tpu.memory_space<vmem>>, vector<1x32x32xbf16>
    %7 = vector.shape_cast %6 : vector<1x32x32xbf16> to vector<32x32xbf16>
    %cst = arith.constant dense<0.000000e+00> : vector<16x32xf32>
    %8 = tpu.matmul %5, %7, %cst {dimension_numbers = #tpu.dot_dimension_numbers<[1], [0], [0], [1], [0, 0, 1, 1], [], []>} : vector<16x32xbf16>, vector<32x32xbf16>, vector<16x32xf32> -> vector<16x32xf32>
    %9 = arith.addf %3, %8 : vector<16x32xf32>
    %c0_7 = arith.constant 0 : index
    %c0_8 = arith.constant 0 : index
    %10 = vector.load %arg8[%c0_7, %c0_8] : memref<16x32xf32, #tpu.memory_space<vmem>>, vector<16x32xf32>
    tpu.vector_store %arg8[%c0_7, %c0_8], %9 {strides = array<i32>} : memref<16x32xf32, #tpu.memory_space<vmem>>, vector<16x32xf32>,
    %c0_i32_9 = arith.constant 0 : i32
    %11 = arith.cmpi eq, %arg3, %c0_i32_9 : i32
    %12 = arith.extui %11 : i1 to i32
    %c0_i32_10 = arith.constant 0 : i32
    %13 = arith.cmpi ne, %12, %c0_i32_10 : i32
    scf.if %13 {
      %c0_11 = arith.constant 0 : index
      %c0_12 = arith.constant 0 : index
      %14 = vector.load %arg8[%c0_11, %c0_12] : memref<16x32xf32, #tpu.memory_space<vmem>>, vector<16x32xf32>
      %c0_13 = arith.constant 0 : index
      %c0_14 = arith.constant 0 : index
      %c0_15 = arith.constant 0 : index
      %15 = vector.load %arg6[%c0_13, %c0_14, %c0_15] : memref<1x1x32xf32, #tpu.memory_space<vmem>>, vector<1x1x32xf32>
      %16 = vector.shape_cast %15 : vector<1x1x32xf32> to vector<1x32xf32>
      %17 = vector.broadcast %16 : vector<1x32xf32> to vector<16x32xf32>
      %18 = arith.addf %14, %17 : vector<16x32xf32>
      %19 = arith.truncf %18 : vector<16x32xf32> to vector<16x32xbf16>
      %c0_16 = arith.constant 0 : index
      %c0_17 = arith.constant 0 : index
      %c0_18 = arith.constant 0 : index
      %20 = vector.load %arg7[%c0_16, %c0_17, %c0_18] : memref<1x16x32xbf16, #tpu.memory_space<vmem>>, vector<1x16x32xbf16>
      %21 = vector.shape_cast %20 : vector<1x16x32xbf16> to vector<16x32xbf16>
      %22 = vector.shape_cast %19 : vector<16x32xbf16> to vector<1x16x32xbf16>
      tpu.vector_store %arg7[%c0_16, %c0_17, %c0_18], %22 {strides = array<i32>} : memref<1x16x32xbf16, #tpu.memory_space<vmem>>, vector<1x16x32xbf16>,
    } else {
    }
    return
  }
  func.func @transform_0(%arg0: i32, %arg1: i32, %arg2: i32, %arg3: i32) -> (i32, i32) {
    %c0_i32 = arith.constant 0 : i32
    return %arg0, %arg3 : i32, i32
  }
  func.func @transform_1(%arg0: i32, %arg1: i32, %arg2: i32, %arg3: i32) -> (i32, i32, i32) {
    %c0_i32 = arith.constant 0 : i32
    return %arg1, %arg3, %arg2 : i32, i32, i32
  }
  func.func @transform_2(%arg0: i32, %arg1: i32, %arg2: i32, %arg3: i32) -> (i32, i32, i32) {
    %c0_i32 = arith.constant 0 : i32
    %c0_i32_0 = arith.constant 0 : i32
    return %arg1, %c0_i32, %arg2 : i32, i32, i32
  }
  func.func @transform_3(%arg0: i32, %arg1: i32, %arg2: i32, %arg3: i32) -> (i32, i32, i32) {
    %c0_i32 = arith.constant 0 : i32
    return %arg1, %arg0, %arg2 : i32, i32, i32
  }
}

module attributes {stable_mosaic.version = 11 : i64} {
  func.func @_matmul_bias_ln_kernel(%arg0: i32, %arg1: i32, %arg2: memref<16x32xbf16, #tpu.memory_space<vmem>>, %arg3: memref<32x32xbf16, #tpu.memory_space<vmem>>, %arg4: memref<1x32xf32, #tpu.memory_space<vmem>>, %arg5: memref<16x32xf32, #tpu.memory_space<vmem>>, %arg6: memref<1x32xf32, #tpu.memory_space<vmem>>, %arg7: memref<1x32xf32, #tpu.memory_space<vmem>>, %arg8: memref<16x32xf32, #tpu.memory_space<vmem>>, %arg9: memref<16x32xf32, #tpu.memory_space<vmem>>) attributes {dimension_semantics = [#tpu.dimension_semantics<parallel>, #tpu.dimension_semantics<arbitrary>], iteration_bounds = array<i64: 1, 1>, scalar_prefetch = 0 : i64, scratch_operands = 1 : i64, tpu.core_type = #tpu.core_type<tc>, window_params = [{transform_indices = @transform_0, window_bounds = array<i64: 16, 32>}, {transform_indices = @transform_1, window_bounds = array<i64: 32, 32>}, {pipeline_mode = #tpu.pipeline_mode<synchronous>, transform_indices = @transform_2, window_bounds = array<i64: 1, 32>}, {transform_indices = @transform_3, window_bounds = array<i64: 16, 32>}, {pipeline_mode = #tpu.pipeline_mode<synchronous>, transform_indices = @transform_4, window_bounds = array<i64: 1, 32>}, {pipeline_mode = #tpu.pipeline_mode<synchronous>, transform_indices = @transform_5, window_bounds = array<i64: 1, 32>}, {transform_indices = @transform_6, window_bounds = array<i64: 16, 32>}]} {
    %c0_i32 = arith.constant 0 : i32
    %0 = arith.cmpi eq, %arg1, %c0_i32 : i32
    %1 = arith.extui %0 : i1 to i32
    %c0_i32_0 = arith.constant 0 : i32
    %2 = arith.cmpi ne, %1, %c0_i32_0 : i32
    scf.if %2 {
      %cst_10 = arith.constant 0.000000e+00 : f32
      %12 = vector.broadcast %cst_10 : f32 to vector<16x32xf32>
      %c0_11 = arith.constant 0 : index
      %c0_12 = arith.constant 0 : index
      %13 = vector.load %arg9[%c0_11, %c0_12] : memref<16x32xf32, #tpu.memory_space<vmem>>, vector<16x32xf32>
      tpu.vector_store %arg9[%c0_11, %c0_12], %12 {strides = array<i32>} : memref<16x32xf32, #tpu.memory_space<vmem>>, vector<16x32xf32>,
    } else {
    }
    %c0 = arith.constant 0 : index
    %c0_1 = arith.constant 0 : index
    %3 = vector.load %arg9[%c0, %c0_1] : memref<16x32xf32, #tpu.memory_space<vmem>>, vector<16x32xf32>
    %c0_2 = arith.constant 0 : index
    %c0_3 = arith.constant 0 : index
    %4 = vector.load %arg2[%c0_2, %c0_3] : memref<16x32xbf16, #tpu.memory_space<vmem>>, vector<16x32xbf16>
    %c0_4 = arith.constant 0 : index
    %c0_5 = arith.constant 0 : index
    %5 = vector.load %arg3[%c0_4, %c0_5] : memref<32x32xbf16, #tpu.memory_space<vmem>>, vector<32x32xbf16>
    %cst = arith.constant dense<0.000000e+00> : vector<16x32xf32>
    %6 = tpu.matmul %4, %5, %cst {dimension_numbers = #tpu.dot_dimension_numbers<[1], [0], [0], [1], [0, 0, 1, 1], [], []>} : vector<16x32xbf16>, vector<32x32xbf16>, vector<16x32xf32> -> vector<16x32xf32>
    %7 = arith.addf %3, %6 : vector<16x32xf32>
    %c0_6 = arith.constant 0 : index
    %c0_7 = arith.constant 0 : index
    %8 = vector.load %arg9[%c0_6, %c0_7] : memref<16x32xf32, #tpu.memory_space<vmem>>, vector<16x32xf32>
    tpu.vector_store %arg9[%c0_6, %c0_7], %7 {strides = array<i32>} : memref<16x32xf32, #tpu.memory_space<vmem>>, vector<16x32xf32>,
    %c0_i32_8 = arith.constant 0 : i32
    %9 = arith.cmpi eq, %arg1, %c0_i32_8 : i32
    %10 = arith.extui %9 : i1 to i32
    %c0_i32_9 = arith.constant 0 : i32
    %11 = arith.cmpi ne, %10, %c0_i32_9 : i32
    scf.if %11 {
      %c0_10 = arith.constant 0 : index
      %c0_11 = arith.constant 0 : index
      %12 = vector.load %arg9[%c0_10, %c0_11] : memref<16x32xf32, #tpu.memory_space<vmem>>, vector<16x32xf32>
      %c0_12 = arith.constant 0 : index
      %c0_13 = arith.constant 0 : index
      %13 = vector.load %arg4[%c0_12, %c0_13] : memref<1x32xf32, #tpu.memory_space<vmem>>, vector<1x32xf32>
      %14 = vector.broadcast %13 : vector<1x32xf32> to vector<16x32xf32>
      %15 = arith.addf %12, %14 : vector<16x32xf32>
      %c0_14 = arith.constant 0 : index
      %c0_15 = arith.constant 0 : index
      %16 = vector.load %arg5[%c0_14, %c0_15] : memref<16x32xf32, #tpu.memory_space<vmem>>, vector<16x32xf32>
      %17 = arith.addf %15, %16 : vector<16x32xf32>
      %cst_16 = arith.constant dense<0.000000e+00> : vector<16xf32>
      %18 = vector.multi_reduction <add>, %17, %cst_16 [1] : vector<16x32xf32> to vector<16xf32>
      %19 = vector.shape_cast %18 : vector<16xf32> to vector<16x1xf32>
      %cst_17 = arith.constant 3.200000e+01 : f32
      %20 = vector.broadcast %cst_17 : f32 to vector<16x1xf32>
      %21 = arith.divf %19, %20 : vector<16x1xf32>
      %22 = arith.mulf %17, %17 : vector<16x32xf32>
      %cst_18 = arith.constant dense<0.000000e+00> : vector<16xf32>
      %23 = vector.multi_reduction <add>, %22, %cst_18 [1] : vector<16x32xf32> to vector<16xf32>
      %24 = vector.shape_cast %23 : vector<16xf32> to vector<16x1xf32>
      %cst_19 = arith.constant 3.200000e+01 : f32
      %25 = vector.broadcast %cst_19 : f32 to vector<16x1xf32>
      %26 = arith.divf %24, %25 : vector<16x1xf32>
      %27 = arith.mulf %21, %21 : vector<16x1xf32>
      %28 = arith.subf %26, %27 : vector<16x1xf32>
      %cst_20 = arith.constant 0.000000e+00 : f32
      %29 = vector.broadcast %cst_20 : f32 to vector<16x1xf32>
      %30 = arith.maximumf %28, %29 : vector<16x1xf32>
      %31 = vector.broadcast %21 : vector<16x1xf32> to vector<16x32xf32>
      %32 = arith.subf %17, %31 : vector<16x32xf32>
      %cst_21 = arith.constant 9.99999974E-6 : f32
      %33 = vector.broadcast %cst_21 : f32 to vector<16x1xf32>
      %34 = arith.addf %30, %33 : vector<16x1xf32>
      %35 = math.rsqrt %34 : vector<16x1xf32>
      %36 = vector.broadcast %35 : vector<16x1xf32> to vector<16x32xf32>
      %37 = arith.mulf %32, %36 : vector<16x32xf32>
      %c0_22 = arith.constant 0 : index
      %c0_23 = arith.constant 0 : index
      %38 = vector.load %arg6[%c0_22, %c0_23] : memref<1x32xf32, #tpu.memory_space<vmem>>, vector<1x32xf32>
      %39 = vector.broadcast %38 : vector<1x32xf32> to vector<16x32xf32>
      %40 = arith.mulf %37, %39 : vector<16x32xf32>
      %c0_24 = arith.constant 0 : index
      %c0_25 = arith.constant 0 : index
      %41 = vector.load %arg7[%c0_24, %c0_25] : memref<1x32xf32, #tpu.memory_space<vmem>>, vector<1x32xf32>
      %42 = vector.broadcast %41 : vector<1x32xf32> to vector<16x32xf32>
      %43 = arith.addf %40, %42 : vector<16x32xf32>
      %c0_26 = arith.constant 0 : index
      %c0_27 = arith.constant 0 : index
      %44 = vector.load %arg8[%c0_26, %c0_27] : memref<16x32xf32, #tpu.memory_space<vmem>>, vector<16x32xf32>
      tpu.vector_store %arg8[%c0_26, %c0_27], %43 {strides = array<i32>} : memref<16x32xf32, #tpu.memory_space<vmem>>, vector<16x32xf32>,
    } else {
    }
    return
  }
  func.func @transform_0(%arg0: i32, %arg1: i32) -> (i32, i32) {
    %c0_i32 = arith.constant 0 : i32
    return %arg0, %arg1 : i32, i32
  }
  func.func @transform_1(%arg0: i32, %arg1: i32) -> (i32, i32) {
    %c0_i32 = arith.constant 0 : i32
    %c0_i32_0 = arith.constant 0 : i32
    return %arg1, %c0_i32 : i32, i32
  }
  func.func @transform_2(%arg0: i32, %arg1: i32) -> (i32, i32) {
    %c0_i32 = arith.constant 0 : i32
    %c0_i32_0 = arith.constant 0 : i32
    %c0_i32_1 = arith.constant 0 : i32
    return %c0_i32, %c0_i32_0 : i32, i32
  }
  func.func @transform_3(%arg0: i32, %arg1: i32) -> (i32, i32) {
    %c0_i32 = arith.constant 0 : i32
    %c0_i32_0 = arith.constant 0 : i32
    return %arg0, %c0_i32 : i32, i32
  }
  func.func @transform_4(%arg0: i32, %arg1: i32) -> (i32, i32) {
    %c0_i32 = arith.constant 0 : i32
    %c0_i32_0 = arith.constant 0 : i32
    %c0_i32_1 = arith.constant 0 : i32
    return %c0_i32, %c0_i32_0 : i32, i32
  }
  func.func @transform_5(%arg0: i32, %arg1: i32) -> (i32, i32) {
    %c0_i32 = arith.constant 0 : i32
    %c0_i32_0 = arith.constant 0 : i32
    %c0_i32_1 = arith.constant 0 : i32
    return %c0_i32, %c0_i32_0 : i32, i32
  }
  func.func @transform_6(%arg0: i32, %arg1: i32) -> (i32, i32) {
    %c0_i32 = arith.constant 0 : i32
    %c0_i32_0 = arith.constant 0 : i32
    return %arg0, %c0_i32 : i32, i32
  }
}

module attributes {stable_mosaic.version = 11 : i64} {
  func.func @_attention_kernel(%arg0: i32, %arg1: i32, %arg2: i32, %arg3: memref<1x1x8xi32, #tpu.memory_space<vmem>>, %arg4: memref<1x1x8x32xbf16, #tpu.memory_space<vmem>>, %arg5: memref<1x1x8x32xbf16, #tpu.memory_space<vmem>>, %arg6: memref<1x1x8x32xbf16, #tpu.memory_space<vmem>>, %arg7: memref<1x8x32xbf16, #tpu.memory_space<vmem>>, %arg8: memref<1x2x8x8xf32, #tpu.memory_space<vmem>>) attributes {dimension_semantics = [#tpu.dimension_semantics<parallel>, #tpu.dimension_semantics<parallel>, #tpu.dimension_semantics<parallel>], iteration_bounds = array<i64: 2, 1, 1>, scalar_prefetch = 0 : i64, scratch_operands = 0 : i64, tpu.core_type = #tpu.core_type<tc>, window_params = [{transform_indices = @transform_0, window_bounds = array<i64: 1, 1, 8>}, {transform_indices = @transform_1, window_bounds = array<i64: 1, 1, 8, 32>}, {transform_indices = @transform_2, window_bounds = array<i64: 1, 1, 8, 32>}, {transform_indices = @transform_3, window_bounds = array<i64: 1, 1, 8, 32>}, {transform_indices = @transform_4, window_bounds = array<i64: 1, 8, 32>}, {transform_indices = @transform_5, window_bounds = array<i64: 1, 2, 8, 8>}]} {
    %c0 = arith.constant 0 : index
    %c0_0 = arith.constant 0 : index
    %c0_1 = arith.constant 0 : index
    %0 = vector.load %arg3[%c0, %c0_0, %c0_1] : memref<1x1x8xi32, #tpu.memory_space<vmem>>, vector<1x1x8xi32>
    %1 = vector.shape_cast %0 : vector<1x1x8xi32> to vector<1x8xi32>
    %c0_i32 = arith.constant 0 : i32
    %2 = vector.broadcast %c0_i32 : i32 to vector<1x8xi32>
    %3 = arith.cmpi sgt, %1, %2 : vector<1x8xi32>
    %4 = tpu.iota {dimensions = array<i32: 0>} : vector<8x8xi32>
    %c8_i32 = arith.constant 8 : i32
    %5 = arith.muli %arg2, %c8_i32 : i32
    %6 = vector.broadcast %5 : i32 to vector<8x8xi32>
    %7 = arith.addi %4, %6 : vector<8x8xi32>
    %8 = tpu.iota {dimensions = array<i32: 1>} : vector<8x8xi32>
    %9 = arith.cmpi sle, %8, %7 : vector<8x8xi32>
    %10 = vector.broadcast %3 : vector<1x8xi1> to vector<8x8xi1>
    %11 = arith.andi %10, %9 : vector<8x8xi1>
    %cst = arith.constant 0.000000e+00 : f32
    %cst_2 = arith.constant -1.000000e+09 : f32
    %12 = vector.broadcast %cst : f32 to vector<8x8xf32>
    %13 = vector.broadcast %cst_2 : f32 to vector<8x8xf32>
    %14 = arith.select %11, %12, %13 : vector<8x8xi1>, vector<8x8xf32>
    %c0_3 = arith.constant 0 : index
    %c0_4 = arith.constant 0 : index
    %c0_5 = arith.constant 0 : index
    %c0_6 = arith.constant 0 : index
    %15 = vector.load %arg4[%c0_3, %c0_4, %c0_5, %c0_6] : memref<1x1x8x32xbf16, #tpu.memory_space<vmem>>, vector<1x1x8x32xbf16>
    %16 = vector.shape_cast %15 : vector<1x1x8x32xbf16> to vector<8x32xbf16>
    %c0_7 = arith.constant 0 : index
    %c0_8 = arith.constant 0 : index
    %c0_9 = arith.constant 0 : index
    %c0_10 = arith.constant 0 : index
    %17 = vector.load %arg5[%c0_7, %c0_8, %c0_9, %c0_10] : memref<1x1x8x32xbf16, #tpu.memory_space<vmem>>, vector<1x1x8x32xbf16>
    %18 = vector.shape_cast %17 : vector<1x1x8x32xbf16> to vector<8x32xbf16>
    %c0_11 = arith.constant 0 : index
    %c0_12 = arith.constant 0 : index
    %c0_13 = arith.constant 0 : index
    %c0_14 = arith.constant 0 : index
    %19 = vector.load %arg6[%c0_11, %c0_12, %c0_13, %c0_14] : memref<1x1x8x32xbf16, #tpu.memory_space<vmem>>, vector<1x1x8x32xbf16>
    %20 = vector.shape_cast %19 : vector<1x1x8x32xbf16> to vector<8x32xbf16>
    %21 = vector.extract_strided_slice %16 {offsets = [0, 0], sizes = [8, 16], strides = [1, 1]} : vector<8x32xbf16> to vector<8x16xbf16>
    %22 = vector.extract_strided_slice %18 {offsets = [0, 0], sizes = [8, 16], strides = [1, 1]} : vector<8x32xbf16> to vector<8x16xbf16>
    %cst_15 = arith.constant dense<0.000000e+00> : vector<8x8xf32>
    %23 = tpu.matmul %21, %22, %cst_15 {dimension_numbers = #tpu.dot_dimension_numbers<[1], [1], [0], [0], [0, 0, 1, 0], [], []>} : vector<8x16xbf16>, vector<8x16xbf16>, vector<8x8xf32> -> vector<8x8xf32>
    %24 = arith.addf %23, %14 : vector<8x8xf32>
    %cst_16 = arith.constant dense<0xFF800000> : vector<8xf32>
    %25 = vector.multi_reduction <maximumf>, %24, %cst_16 [1] : vector<8x8xf32> to vector<8xf32>
    %26 = vector.shape_cast %25 : vector<8xf32> to vector<8x1xf32>
    %27 = vector.broadcast %26 : vector<8x1xf32> to vector<8x8xf32>
    %28 = arith.subf %24, %27 : vector<8x8xf32>
    %29 = math.exp %28 : vector<8x8xf32>
    %cst_17 = arith.constant dense<0.000000e+00> : vector<8xf32>
    %30 = vector.multi_reduction <add>, %29, %cst_17 [1] : vector<8x8xf32> to vector<8xf32>
    %31 = vector.shape_cast %30 : vector<8xf32> to vector<8x1xf32>
    %32 = vector.broadcast %31 : vector<8x1xf32> to vector<8x8xf32>
    %33 = arith.divf %29, %32 : vector<8x8xf32>
    %c0_18 = arith.constant 0 : index
    %c0_19 = arith.constant 0 : index
    %c0_20 = arith.constant 0 : index
    %c0_21 = arith.constant 0 : index
    %34 = vector.load %arg8[%c0_18, %c0_19, %c0_20, %c0_21] : memref<1x2x8x8xf32, #tpu.memory_space<vmem>>, vector<1x1x8x8xf32>
    %35 = vector.shape_cast %34 : vector<1x1x8x8xf32> to vector<8x8xf32>
    %36 = vector.shape_cast %33 : vector<8x8xf32> to vector<1x1x8x8xf32>
    tpu.vector_store %arg8[%c0_18, %c0_19, %c0_20, %c0_21], %36 {strides = array<i32>} : memref<1x2x8x8xf32, #tpu.memory_space<vmem>>, vector<1x1x8x8xf32>,
    %37 = arith.truncf %33 : vector<8x8xf32> to vector<8x8xbf16>
    %38 = vector.extract_strided_slice %20 {offsets = [0, 0], sizes = [8, 16], strides = [1, 1]} : vector<8x32xbf16> to vector<8x16xbf16>
    %cst_22 = arith.constant dense<0.000000e+00> : vector<8x16xf32>
    %39 = tpu.matmul %37, %38, %cst_22 {dimension_numbers = #tpu.dot_dimension_numbers<[1], [0], [0], [1], [0, 0, 1, 1], [], []>} : vector<8x8xbf16>, vector<8x16xbf16>, vector<8x16xf32> -> vector<8x16xf32>
    %40 = arith.truncf %39 : vector<8x16xf32> to vector<8x16xbf16>
    %c0_23 = arith.constant 0 : index
    %c0_24 = arith.constant 0 : index
    %c0_25 = arith.constant 0 : index
    %41 = vector.load %arg7[%c0_23, %c0_24, %c0_25] : memref<1x8x32xbf16, #tpu.memory_space<vmem>>, vector<1x8x16xbf16>
    %42 = vector.shape_cast %41 : vector<1x8x16xbf16> to vector<8x16xbf16>
    %43 = vector.shape_cast %40 : vector<8x16xbf16> to vector<1x8x16xbf16>
    tpu.vector_store %arg7[%c0_23, %c0_24, %c0_25], %43 {strides = array<i32>} : memref<1x8x32xbf16, #tpu.memory_space<vmem>>, vector<1x8x16xbf16>,
    %44 = vector.extract_strided_slice %16 {offsets = [0, 16], sizes = [8, 16], strides = [1, 1]} : vector<8x32xbf16> to vector<8x16xbf16>
    %45 = vector.extract_strided_slice %18 {offsets = [0, 16], sizes = [8, 16], strides = [1, 1]} : vector<8x32xbf16> to vector<8x16xbf16>
    %cst_26 = arith.constant dense<0.000000e+00> : vector<8x8xf32>
    %46 = tpu.matmul %44, %45, %cst_26 {dimension_numbers = #tpu.dot_dimension_numbers<[1], [1], [0], [0], [0, 0, 1, 0], [], []>} : vector<8x16xbf16>, vector<8x16xbf16>, vector<8x8xf32> -> vector<8x8xf32>
    %47 = arith.addf %46, %14 : vector<8x8xf32>
    %cst_27 = arith.constant dense<0xFF800000> : vector<8xf32>
    %48 = vector.multi_reduction <maximumf>, %47, %cst_27 [1] : vector<8x8xf32> to vector<8xf32>
    %49 = vector.shape_cast %48 : vector<8xf32> to vector<8x1xf32>
    %50 = vector.broadcast %49 : vector<8x1xf32> to vector<8x8xf32>
    %51 = arith.subf %47, %50 : vector<8x8xf32>
    %52 = math.exp %51 : vector<8x8xf32>
    %cst_28 = arith.constant dense<0.000000e+00> : vector<8xf32>
    %53 = vector.multi_reduction <add>, %52, %cst_28 [1] : vector<8x8xf32> to vector<8xf32>
    %54 = vector.shape_cast %53 : vector<8xf32> to vector<8x1xf32>
    %55 = vector.broadcast %54 : vector<8x1xf32> to vector<8x8xf32>
    %56 = arith.divf %52, %55 : vector<8x8xf32>
    %c0_29 = arith.constant 0 : index
    %c1 = arith.constant 1 : index
    %c0_30 = arith.constant 0 : index
    %c0_31 = arith.constant 0 : index
    %57 = vector.load %arg8[%c0_29, %c1, %c0_30, %c0_31] : memref<1x2x8x8xf32, #tpu.memory_space<vmem>>, vector<1x1x8x8xf32>
    %58 = vector.shape_cast %57 : vector<1x1x8x8xf32> to vector<8x8xf32>
    %59 = vector.shape_cast %56 : vector<8x8xf32> to vector<1x1x8x8xf32>
    tpu.vector_store %arg8[%c0_29, %c1, %c0_30, %c0_31], %59 {strides = array<i32>} : memref<1x2x8x8xf32, #tpu.memory_space<vmem>>, vector<1x1x8x8xf32>,
    %60 = arith.truncf %56 : vector<8x8xf32> to vector<8x8xbf16>
    %61 = vector.extract_strided_slice %20 {offsets = [0, 16], sizes = [8, 16], strides = [1, 1]} : vector<8x32xbf16> to vector<8x16xbf16>
    %cst_32 = arith.constant dense<0.000000e+00> : vector<8x16xf32>
    %62 = tpu.matmul %60, %61, %cst_32 {dimension_numbers = #tpu.dot_dimension_numbers<[1], [0], [0], [1], [0, 0, 1, 1], [], []>} : vector<8x8xbf16>, vector<8x16xbf16>, vector<8x16xf32> -> vector<8x16xf32>
    %63 = arith.truncf %62 : vector<8x16xf32> to vector<8x16xbf16>
    %c0_33 = arith.constant 0 : index
    %c0_34 = arith.constant 0 : index
    %c16 = arith.constant 16 : index
    %64 = vector.load %arg7[%c0_33, %c0_34, %c16] : memref<1x8x32xbf16, #tpu.memory_space<vmem>>, vector<1x8x16xbf16>
    %65 = vector.shape_cast %64 : vector<1x8x16xbf16> to vector<8x16xbf16>
    %66 = vector.shape_cast %63 : vector<8x16xbf16> to vector<1x8x16xbf16>
    tpu.vector_store %arg7[%c0_33, %c0_34, %c16], %66 {strides = array<i32>} : memref<1x8x32xbf16, #tpu.memory_space<vmem>>, vector<1x8x16xbf16>,
    return
  }
  func.func @transform_0(%arg0: i32, %arg1: i32, %arg2: i32) -> (i32, i32, i32) {
    %c0_i32 = arith.constant 0 : i32
    %c0_i32_0 = arith.constant 0 : i32
    %c0_i32_1 = arith.constant 0 : i32
    return %arg0, %c0_i32, %c0_i32_0 : i32, i32, i32
  }
  func.func @transform_1(%arg0: i32, %arg1: i32, %arg2: i32) -> (i32, i32, i32, i32) {
    %c0_i32 = arith.constant 0 : i32
    %c0_i32_0 = arith.constant 0 : i32
    return %c0_i32, %arg0, %arg2, %arg1 : i32, i32, i32, i32
  }
  func.func @transform_2(%arg0: i32, %arg1: i32, %arg2: i32) -> (i32, i32, i32, i32) {
    %c1_i32 = arith.constant 1 : i32
    %c0_i32 = arith.constant 0 : i32
    %c0_i32_0 = arith.constant 0 : i32
    return %c1_i32, %arg0, %c0_i32, %arg1 : i32, i32, i32, i32
  }
  func.func @transform_3(%arg0: i32, %arg1: i32, %arg2: i32) -> (i32, i32, i32, i32) {
    %c2_i32 = arith.constant 2 : i32
    %c0_i32 = arith.constant 0 : i32
    %c0_i32_0 = arith.constant 0 : i32
    return %c2_i32, %arg0, %c0_i32, %arg1 : i32, i32, i32, i32
  }
  func.func @transform_4(%arg0: i32, %arg1: i32, %arg2: i32) -> (i32, i32, i32) {
    %c0_i32 = arith.constant 0 : i32
    return %arg0, %arg2, %arg1 : i32, i32, i32
  }
  func.func @transform_5(%arg0: i32, %arg1: i32, %arg2: i32) -> (i32, i32, i32, i32) {
    %c0_i32 = arith.constant 0 : i32
    %c0_i32_0 = arith.constant 0 : i32
    return %arg0, %arg1, %arg2, %c0_i32 : i32, i32, i32, i32
  }
}

module attributes {stable_mosaic.version = 11 : i64} {
  func.func @_matmul_bias_kernel(%arg0: i32, %arg1: i32, %arg2: i32, %arg3: memref<16x32xf32, #tpu.memory_space<vmem>>, %arg4: memref<32x64xbf16, #tpu.memory_space<vmem>>, %arg5: memref<1x64xf32, #tpu.memory_space<vmem>>, %arg6: memref<16x64xbf16, #tpu.memory_space<vmem>>, %arg7: memref<16x64xf32, #tpu.memory_space<vmem>>) attributes {dimension_semantics = [#tpu.dimension_semantics<parallel>, #tpu.dimension_semantics<parallel>, #tpu.dimension_semantics<arbitrary>], iteration_bounds = array<i64: 1, 1, 1>, scalar_prefetch = 0 : i64, scratch_operands = 1 : i64, tpu.core_type = #tpu.core_type<tc>, window_params = [{transform_indices = @transform_0, window_bounds = array<i64: 16, 32>}, {transform_indices = @transform_1, window_bounds = array<i64: 32, 64>}, {transform_indices = @transform_2, window_bounds = array<i64: 1, 64>}, {transform_indices = @transform_3, window_bounds = array<i64: 16, 64>}]} {
    %c0_i32 = arith.constant 0 : i32
    %0 = arith.cmpi eq, %arg2, %c0_i32 : i32
    %1 = arith.extui %0 : i1 to i32
    %c0_i32_0 = arith.constant 0 : i32
    %2 = arith.cmpi ne, %1, %c0_i32_0 : i32
    scf.if %2 {
      %cst_10 = arith.constant 0.000000e+00 : f32
      %13 = vector.broadcast %cst_10 : f32 to vector<16x64xf32>
      %c0_11 = arith.constant 0 : index
      %c0_12 = arith.constant 0 : index
      %14 = vector.load %arg7[%c0_11, %c0_12] : memref<16x64xf32, #tpu.memory_space<vmem>>, vector<16x64xf32>
      tpu.vector_store %arg7[%c0_11, %c0_12], %13 {strides = array<i32>} : memref<16x64xf32, #tpu.memory_space<vmem>>, vector<16x64xf32>,
    } else {
    }
    %c0 = arith.constant 0 : index
    %c0_1 = arith.constant 0 : index
    %3 = vector.load %arg7[%c0, %c0_1] : memref<16x64xf32, #tpu.memory_space<vmem>>, vector<16x64xf32>
    %c0_2 = arith.constant 0 : index
    %c0_3 = arith.constant 0 : index
    %4 = vector.load %arg3[%c0_2, %c0_3] : memref<16x32xf32, #tpu.memory_space<vmem>>, vector<16x32xf32>
    %5 = arith.truncf %4 : vector<16x32xf32> to vector<16x32xbf16>
    %c0_4 = arith.constant 0 : index
    %c0_5 = arith.constant 0 : index
    %6 = vector.load %arg4[%c0_4, %c0_5] : memref<32x64xbf16, #tpu.memory_space<vmem>>, vector<32x64xbf16>
    %cst = arith.constant dense<0.000000e+00> : vector<16x64xf32>
    %7 = tpu.matmul %5, %6, %cst {dimension_numbers = #tpu.dot_dimension_numbers<[1], [0], [0], [1], [0, 0, 1, 1], [], []>} : vector<16x32xbf16>, vector<32x64xbf16>, vector<16x64xf32> -> vector<16x64xf32>
    %8 = arith.addf %3, %7 : vector<16x64xf32>
    %c0_6 = arith.constant 0 : index
    %c0_7 = arith.constant 0 : index
    %9 = vector.load %arg7[%c0_6, %c0_7] : memref<16x64xf32, #tpu.memory_space<vmem>>, vector<16x64xf32>
    tpu.vector_store %arg7[%c0_6, %c0_7], %8 {strides = array<i32>} : memref<16x64xf32, #tpu.memory_space<vmem>>, vector<16x64xf32>,
    %c0_i32_8 = arith.constant 0 : i32
    %10 = arith.cmpi eq, %arg2, %c0_i32_8 : i32
    %11 = arith.extui %10 : i1 to i32
    %c0_i32_9 = arith.constant 0 : i32
    %12 = arith.cmpi ne, %11, %c0_i32_9 : i32
    scf.if %12 {
      %c0_10 = arith.constant 0 : index
      %c0_11 = arith.constant 0 : index
      %13 = vector.load %arg7[%c0_10, %c0_11] : memref<16x64xf32, #tpu.memory_space<vmem>>, vector<16x64xf32>
      %c0_12 = arith.constant 0 : index
      %c0_13 = arith.constant 0 : index
      %14 = vector.load %arg5[%c0_12, %c0_13] : memref<1x64xf32, #tpu.memory_space<vmem>>, vector<1x64xf32>
      %15 = vector.broadcast %14 : vector<1x64xf32> to vector<16x64xf32>
      %16 = arith.addf %13, %15 : vector<16x64xf32>
      %cst_14 = arith.constant 0.000000e+00 : f32
      %17 = vector.broadcast %cst_14 : f32 to vector<16x64xf32>
      %18 = arith.maximumf %16, %17 : vector<16x64xf32>
      %19 = arith.truncf %18 : vector<16x64xf32> to vector<16x64xbf16>
      %c0_15 = arith.constant 0 : index
      %c0_16 = arith.constant 0 : index
      %20 = vector.load %arg6[%c0_15, %c0_16] : memref<16x64xbf16, #tpu.memory_space<vmem>>, vector<16x64xbf16>
      tpu.vector_store %arg6[%c0_15, %c0_16], %19 {strides = array<i32>} : memref<16x64xbf16, #tpu.memory_space<vmem>>, vector<16x64xbf16>,
    } else {
    }
    return
  }
  func.func @transform_0(%arg0: i32, %arg1: i32, %arg2: i32) -> (i32, i32) {
    %c0_i32 = arith.constant 0 : i32
    return %arg0, %arg2 : i32, i32
  }
  func.func @transform_1(%arg0: i32, %arg1: i32, %arg2: i32) -> (i32, i32) {
    %c0_i32 = arith.constant 0 : i32
    return %arg2, %arg1 : i32, i32
  }
  func.func @transform_2(%arg0: i32, %arg1: i32, %arg2: i32) -> (i32, i32) {
    %c0_i32 = arith.constant 0 : i32
    %c0_i32_0 = arith.constant 0 : i32
    return %c0_i32, %arg1 : i32, i32
  }
  func.func @transform_3(%arg0: i32, %arg1: i32, %arg2: i32) -> (i32, i32) {
    %c0_i32 = arith.constant 0 : i32
    return %arg0, %arg1 : i32, i32
  }
}

module attributes {stable_mosaic.version = 11 : i64} {
  func.func @_matmul_bias_ln_kernel(%arg0: i32, %arg1: i32, %arg2: memref<16x64xbf16, #tpu.memory_space<vmem>>, %arg3: memref<64x32xbf16, #tpu.memory_space<vmem>>, %arg4: memref<1x32xf32, #tpu.memory_space<vmem>>, %arg5: memref<16x32xf32, #tpu.memory_space<vmem>>, %arg6: memref<1x32xf32, #tpu.memory_space<vmem>>, %arg7: memref<1x32xf32, #tpu.memory_space<vmem>>, %arg8: memref<16x32xf32, #tpu.memory_space<vmem>>, %arg9: memref<16x32xf32, #tpu.memory_space<vmem>>) attributes {dimension_semantics = [#tpu.dimension_semantics<parallel>, #tpu.dimension_semantics<arbitrary>], iteration_bounds = array<i64: 1, 1>, scalar_prefetch = 0 : i64, scratch_operands = 1 : i64, tpu.core_type = #tpu.core_type<tc>, window_params = [{transform_indices = @transform_0, window_bounds = array<i64: 16, 64>}, {transform_indices = @transform_1, window_bounds = array<i64: 64, 32>}, {pipeline_mode = #tpu.pipeline_mode<synchronous>, transform_indices = @transform_2, window_bounds = array<i64: 1, 32>}, {transform_indices = @transform_3, window_bounds = array<i64: 16, 32>}, {pipeline_mode = #tpu.pipeline_mode<synchronous>, transform_indices = @transform_4, window_bounds = array<i64: 1, 32>}, {pipeline_mode = #tpu.pipeline_mode<synchronous>, transform_indices = @transform_5, window_bounds = array<i64: 1, 32>}, {transform_indices = @transform_6, window_bounds = array<i64: 16, 32>}]} {
    %c0_i32 = arith.constant 0 : i32
    %0 = arith.cmpi eq, %arg1, %c0_i32 : i32
    %1 = arith.extui %0 : i1 to i32
    %c0_i32_0 = arith.constant 0 : i32
    %2 = arith.cmpi ne, %1, %c0_i32_0 : i32
    scf.if %2 {
      %cst_10 = arith.constant 0.000000e+00 : f32
      %12 = vector.broadcast %cst_10 : f32 to vector<16x32xf32>
      %c0_11 = arith.constant 0 : index
      %c0_12 = arith.constant 0 : index
      %13 = vector.load %arg9[%c0_11, %c0_12] : memref<16x32xf32, #tpu.memory_space<vmem>>, vector<16x32xf32>
      tpu.vector_store %arg9[%c0_11, %c0_12], %12 {strides = array<i32>} : memref<16x32xf32, #tpu.memory_space<vmem>>, vector<16x32xf32>,
    } else {
    }
    %c0 = arith.constant 0 : index
    %c0_1 = arith.constant 0 : index
    %3 = vector.load %arg9[%c0, %c0_1] : memref<16x32xf32, #tpu.memory_space<vmem>>, vector<16x32xf32>
    %c0_2 = arith.constant 0 : index
    %c0_3 = arith.constant 0 : index
    %4 = vector.load %arg2[%c0_2, %c0_3] : memref<16x64xbf16, #tpu.memory_space<vmem>>, vector<16x64xbf16>
    %c0_4 = arith.constant 0 : index
    %c0_5 = arith.constant 0 : index
    %5 = vector.load %arg3[%c0_4, %c0_5] : memref<64x32xbf16, #tpu.memory_space<vmem>>, vector<64x32xbf16>
    %cst = arith.constant dense<0.000000e+00> : vector<16x32xf32>
    %6 = tpu.matmul %4, %5, %cst {dimension_numbers = #tpu.dot_dimension_numbers<[1], [0], [0], [1], [0, 0, 1, 1], [], []>} : vector<16x64xbf16>, vector<64x32xbf16>, vector<16x32xf32> -> vector<16x32xf32>
    %7 = arith.addf %3, %6 : vector<16x32xf32>
    %c0_6 = arith.constant 0 : index
    %c0_7 = arith.constant 0 : index
    %8 = vector.load %arg9[%c0_6, %c0_7] : memref<16x32xf32, #tpu.memory_space<vmem>>, vector<16x32xf32>
    tpu.vector_store %arg9[%c0_6, %c0_7], %7 {strides = array<i32>} : memref<16x32xf32, #tpu.memory_space<vmem>>, vector<16x32xf32>,
    %c0_i32_8 = arith.constant 0 : i32
    %9 = arith.cmpi eq, %arg1, %c0_i32_8 : i32
    %10 = arith.extui %9 : i1 to i32
    %c0_i32_9 = arith.constant 0 : i32
    %11 = arith.cmpi ne, %10, %c0_i32_9 : i32
    scf.if %11 {
      %c0_10 = arith.constant 0 : index
      %c0_11 = arith.constant 0 : index
      %12 = vector.load %arg9[%c0_10, %c0_11] : memref<16x32xf32, #tpu.memory_space<vmem>>, vector<16x32xf32>
      %c0_12 = arith.constant 0 : index
      %c0_13 = arith.constant 0 : index
      %13 = vector.load %arg4[%c0_12, %c0_13] : memref<1x32xf32, #tpu.memory_space<vmem>>, vector<1x32xf32>
      %14 = vector.broadcast %13 : vector<1x32xf32> to vector<16x32xf32>
      %15 = arith.addf %12, %14 : vector<16x32xf32>
      %c0_14 = arith.constant 0 : index
      %c0_15 = arith.constant 0 : index
      %16 = vector.load %arg5[%c0_14, %c0_15] : memref<16x32xf32, #tpu.memory_space<vmem>>, vector<16x32xf32>
      %17 = arith.addf %15, %16 : vector<16x32xf32>
      %cst_16 = arith.constant dense<0.000000e+00> : vector<16xf32>
      %18 = vector.multi_reduction <add>, %17, %cst_16 [1] : vector<16x32xf32> to vector<16xf32>
      %19 = vector.shape_cast %18 : vector<16xf32> to vector<16x1xf32>
      %cst_17 = arith.constant 3.200000e+01 : f32
      %20 = vector.broadcast %cst_17 : f32 to vector<16x1xf32>
      %21 = arith.divf %19, %20 : vector<16x1xf32>
      %22 = arith.mulf %17, %17 : vector<16x32xf32>
      %cst_18 = arith.constant dense<0.000000e+00> : vector<16xf32>
      %23 = vector.multi_reduction <add>, %22, %cst_18 [1] : vector<16x32xf32> to vector<16xf32>
      %24 = vector.shape_cast %23 : vector<16xf32> to vector<16x1xf32>
      %cst_19 = arith.constant 3.200000e+01 : f32
      %25 = vector.broadcast %cst_19 : f32 to vector<16x1xf32>
      %26 = arith.divf %24, %25 : vector<16x1xf32>
      %27 = arith.mulf %21, %21 : vector<16x1xf32>
      %28 = arith.subf %26, %27 : vector<16x1xf32>
      %cst_20 = arith.constant 0.000000e+00 : f32
      %29 = vector.broadcast %cst_20 : f32 to vector<16x1xf32>
      %30 = arith.maximumf %28, %29 : vector<16x1xf32>
      %31 = vector.broadcast %21 : vector<16x1xf32> to vector<16x32xf32>
      %32 = arith.subf %17, %31 : vector<16x32xf32>
      %cst_21 = arith.constant 9.99999974E-6 : f32
      %33 = vector.broadcast %cst_21 : f32 to vector<16x1xf32>
      %34 = arith.addf %30, %33 : vector<16x1xf32>
      %35 = math.rsqrt %34 : vector<16x1xf32>
      %36 = vector.broadcast %35 : vector<16x1xf32> to vector<16x32xf32>
      %37 = arith.mulf %32, %36 : vector<16x32xf32>
      %c0_22 = arith.constant 0 : index
      %c0_23 = arith.constant 0 : index
      %38 = vector.load %arg6[%c0_22, %c0_23] : memref<1x32xf32, #tpu.memory_space<vmem>>, vector<1x32xf32>
      %39 = vector.broadcast %38 : vector<1x32xf32> to vector<16x32xf32>
      %40 = arith.mulf %37, %39 : vector<16x32xf32>
      %c0_24 = arith.constant 0 : index
      %c0_25 = arith.constant 0 : index
      %41 = vector.load %arg7[%c0_24, %c0_25] : memref<1x32xf32, #tpu.memory_space<vmem>>, vector<1x32xf32>
      %42 = vector.broadcast %41 : vector<1x32xf32> to vector<16x32xf32>
      %43 = arith.addf %40, %42 : vector<16x32xf32>
      %c0_26 = arith.constant 0 : index
      %c0_27 = arith.constant 0 : index
      %44 = vector.load %arg8[%c0_26, %c0_27] : memref<16x32xf32, #tpu.memory_space<vmem>>, vector<16x32xf32>
      tpu.vector_store %arg8[%c0_26, %c0_27], %43 {strides = array<i32>} : memref<16x32xf32, #tpu.memory_space<vmem>>, vector<16x32xf32>,
    } else {
    }
    return
  }
  func.func @transform_0(%arg0: i32, %arg1: i32) -> (i32, i32) {
    %c0_i32 = arith.constant 0 : i32
    return %arg0, %arg1 : i32, i32
  }
  func.func @transform_1(%arg0: i32, %arg1: i32) -> (i32, i32) {
    %c0_i32 = arith.constant 0 : i32
    %c0_i32_0 = arith.constant 0 : i32
    return %arg1, %c0_i32 : i32, i32
  }
  func.func @transform_2(%arg0: i32, %arg1: i32) -> (i32, i32) {
    %c0_i32 = arith.constant 0 : i32
    %c0_i32_0 = arith.constant 0 : i32
    %c0_i32_1 = arith.constant 0 : i32
    return %c0_i32, %c0_i32_0 : i32, i32
  }
  func.func @transform_3(%arg0: i32, %arg1: i32) -> (i32, i32) {
    %c0_i32 = arith.constant 0 : i32
    %c0_i32_0 = arith.constant 0 : i32
    return %arg0, %c0_i32 : i32, i32
  }
  func.func @transform_4(%arg0: i32, %arg1: i32) -> (i32, i32) {
    %c0_i32 = arith.constant 0 : i32
    %c0_i32_0 = arith.constant 0 : i32
    %c0_i32_1 = arith.constant 0 : i32
    return %c0_i32, %c0_i32_0 : i32, i32
  }
  func.func @transform_5(%arg0: i32, %arg1: i32) -> (i32, i32) {
    %c0_i32 = arith.constant 0 : i32
    %c0_i32_0 = arith.constant 0 : i32
    %c0_i32_1 = arith.constant 0 : i32
    return %c0_i32, %c0_i32_0 : i32, i32
  }
  func.func @transform_6(%arg0: i32, %arg1: i32) -> (i32, i32) {
    %c0_i32 = arith.constant 0 : i32
    %c0_i32_0 = arith.constant 0 : i32
    return %arg0, %c0_i32 : i32, i32
  }
}

</mosaic_0001>

<bundles_post_ra>
// kernel: encoder_layer_forward.7
= control target key start
LH: loop header
LB: loop body
LE: loop exit
PB: predicated region body
PF: predicated region fallthrough
CT: control target
= control target key end

     0   :  { %vm28_vm0 = vcmask 261120   ;;  %v207_v0 = vmov 0.0   ;;  %vm208_vm1 = vmmov 0   ;;  %s285_s1 = inlined_call_operand.vmem [shape: bf16[32,32], index: 1, kind: input, shape index: {}]   ;;  %s286_s0 = inlined_call_operand.vmem [shape: bf16[16,32], index: 0, kind: input, shape index: {}]   ;;  %s287_s2 = inlined_call_operand.vmem [shape: f32[1,32], index: 2, kind: input, shape index: {}]   ;;  %s288_s3 = inlined_call_operand.vmem [shape: f32[16,32], index: 3, kind: input, shape index: {}]   ;;  %s289_s4 = inlined_call_operand.vmem [shape: f32[1,32], index: 4, kind: input, shape index: {}]   ;;  %s290_s5 = inlined_call_operand.vmem [shape: f32[1,32], index: 5, kind: input, shape index: {}]   ;;  %s291_s6 = inlined_call_operand.vmem [shape: f32[16,32], index: 6, kind: output, shape index: {}]  }
   0x1   :  { %190 = vmatprep.subr.bf16.mxu0 %v207_v0  ;;  %v200_v1 = vld [vmem:[%s285_s1] sm:$0xff]   ;;  %194 = vmatprep.mubr.msk.bf16.mxu0 %vm208_vm1, %v207_v0  ;;  %29 = vst.msk [vmem:[#allocation2] sm:$0xff] %vm28_vm0, %v207_v0  ;;  %30 = vst.msk [vmem:[#allocation2 + $0x8] sm:$0xff] %vm28_vm0, %v207_v0  ;;  %v201_v2 = vld [vmem:[%s285_s1 + $0x8] sm:$0xff]  }
   0x2   :  { %191 = vmatpush3.bf16.msra.mxu0 %v200_v1  ;;  %v202_v3 = vld [vmem:[%s286_s0] sm:$0xff]   ;;  %v120_v17 = vld [vmem:[%s288_s3 + $0x8] sm:$0xff] }
   0x3   :  { %192 = vmatprep.subr.bf16.mxu0 %v207_v0  ;;  %v184_v12 = vld [vmem:[%s287_s2] ss:$0 sm:$0xff] }
   0x4   :  { %v119_v14 = vld [vmem:[%s288_s3] sm:$0xff] }
   0x5   :  { %v185_v45 = vld [vmem:[%s289_s4] ss:$0 sm:$0xff] }
   0x6   :  { %193 = vmatpush3.bf16.msra.mxu0 %v201_v2  ;;  %v186_v47 = vld [vmem:[%s290_s5] ss:$0 sm:$0xff] }
   0x8   :  { %v31_v4 = vld [vmem:[#allocation2] sm:$0xff]  ;;  %v32_v6 = vld [vmem:[#allocation2 + $0x8] sm:$0xff] }
   0x9   :  { %195 = vmatmul.mubr.msk.bf16.vlgmr.msra.gmra.mrb[0].mxu0 %vm28_vm0, %v202_v3 }
  0xdc   :  { %v94_v5 = vpop.f32.mrb[0].mxu0 }
  0xdd   :  { %v101_v7 = vadd.f32 %v94_v5, %v31_v4  ;;  %v196_v8 = vpop.f32.mrb[1].mxu0 }
  0xde   :  { %v97_v9 = vpop.f32.mrb[2].mxu0 }
  0xdf   :  { %103 = vst.msk [vmem:[#allocation2] sm:$0xff] %vm28_vm0, %v101_v7  ;;  %v102_v10 = vadd.f32 %v97_v9, %v32_v6  ;;  %v197_v11 = vpop.f32.mrb[3].mxu0 }
  0xe1   :  { %104 = vst.msk [vmem:[#allocation2 + $0x8] sm:$0xff] %vm28_vm0, %v102_v10 }
  0xe6   :  { %v108_v13 = vld [vmem:[#allocation2] sm:$0xff] }
  0xe7   :  { %v117_v15 = vadd.f32 %v184_v12, %v108_v13 }
  0xe8   :  { %v109_v16 = vld [vmem:[#allocation2 + $0x8] sm:$0xff] }
  0xe9   :  { %v121_v18 = vadd.f32 %v119_v14, %v117_v15  ;;  %v118_v19 = vadd.f32 %v184_v12, %v109_v16 }
  0xeb   :  { %v123_v20 = vsel %vm28_vm0, %v121_v18, 0.0  ;;  %v132_v21 = vmul.f32 %v121_v18, %v121_v18  ;;  %v122_v22 = vadd.f32 %v120_v17, %v118_v19 }
  0xec   :  { %124 = vadd.xlane.f32.xlu0 %v123_v20 }
  0xed   :  { %v134_v23 = vsel %vm28_vm0, %v132_v21, 0.0  ;;  %v133_v24 = vmul.f32 %v122_v22, %v122_v22  ;;  %v126_v25 = vsel %vm28_vm0, %v122_v22, 0.0 }
  0xee   :  { %135 = vadd.xlane.f32.xlu1 %v134_v23 }
  0xef   :  { %v137_v26 = vsel %vm28_vm0, %v133_v24, 0.0 }
  0xf0   :  { %127 = vadd.xlane.f32.xlu0 %v126_v25 }
  0xf2   :  { %138 = vadd.xlane.f32.xlu1 %v137_v26 }
 0x179   :  { %v125_v27 = vpop.xlane.xlu0 %124 }
 0x17a   :  { %v130_v28 = vmul.f32 0.03125, %v125_v27 }
 0x17b   :  { %v136_v29 = vpop.xlane.xlu1 %135 }
 0x17c   :  { %v142_v30 = vmul.f32 %v130_v28, %v130_v28  ;;  %v140_v31 = vmul.f32 0.03125, %v136_v29  ;;  %v148_v43 = vsub.f32 %v121_v18, %v130_v28 }
 0x17d   :  { %v128_v32 = vpop.xlane.xlu0 %127 }
 0x17e   :  { %v144_v33 = vsub.f32 %v140_v31, %v142_v30  ;;  %v131_v34 = vmul.f32 0.03125, %v128_v32 }
 0x17f   :  { %v139_v35 = vpop.xlane.xlu1 %138 }
 0x180   :  { %v146_v36 = vmax.f32 %v144_v33, 0.0  ;;  %v143_v37 = vmul.f32 %v131_v34, %v131_v34  ;;  %v141_v38 = vmul.f32 0.03125, %v139_v35  ;;  %v149_v49 = vsub.f32 %v122_v22, %v131_v34 }
 0x182   :  { %v150_v39 = vadd.f32 1e-05, %v146_v36  ;;  %v145_v40 = vsub.f32 %v141_v38, %v143_v37 }
 0x184   :  { %203 = vrsqrt.f32 %v150_v39  ;;  %v147_v41 = vmax.f32 %v145_v40, 0.0 }
 0x186   :  { %v151_v42 = vadd.f32 1e-05, %v147_v41 }
 0x188   :  { %205 = vrsqrt.f32 %v151_v42 }
 0x18e   :  { %v204_v44 = vpop.eup %203 }
 0x18f   :  { %v154_v46 = vmul.f32 %v204_v44, %v148_v43 }
 0x191   :  { %v163_v48 = vmul.f32 %v185_v45, %v154_v46 }
 0x192   :  { %v206_v50 = vpop.eup %205 }
 0x193   :  { %v172_v51 = vadd.f32 %v186_v47, %v163_v48  ;;  %v155_v52 = vmul.f32 %v206_v50, %v149_v49 }
 0x195   :  { %174 = vst.msk [vmem:[%s291_s6] sm:$0xff] %vm28_vm0, %v172_v51  ;;  %v164_v53 = vmul.f32 %v185_v45, %v155_v52 }
 0x197   :  { %v173_v54 = vadd.f32 %v186_v47, %v164_v53 }
 0x199   :  { %175 = vst.msk [vmem:[%s291_s6 + $0x8] sm:$0xff] %vm28_vm0, %v173_v54 }

// kernel: encoder_layer_forward.5
= control target key start
LH: loop header
LB: loop body
LE: loop exit
PB: predicated region body
PF: predicated region fallthrough
CT: control target
= control target key end

     0   :  { %s647_s12 = smov 0   ;;  %s649_s13 = smov 0   ;;  %s694_s0 = inlined_call_operand.vmem [shape: f32[16,32], index: 0, kind: input, shape index: {}]   ;;  %s695_s1 = inlined_call_operand.vmem [shape: bf16[3,32,32], index: 1, kind: input, shape index: {}]   ;;  %s696_s2 = inlined_call_operand.vmem [shape: f32[3,1,32], index: 2, kind: input, shape index: {}]   ;;  %s697_s3 = inlined_call_operand.vmem [shape: bf16[3,16,32], index: 3, kind: output, shape index: {}]  }
   0x1   :  { %s651_s14 = smov 0  }
   0x2 LB: > { %s35_s15 = sadd.s32 1, %s619_s13  ;;  %p545_p0 = scmp.ge.s32.totalorder %s623_s14, 1  ;;  %s623_s14 = sphi %s651_s14, %s13_s14   ;;  %s619_s13 = sphi %s649_s13, %s699_s13   ;;  %s615_s12 = sphi %s647_s12, %s698_s12  }
   0x3   : > { %p37_p1 = scmp.ge.s32.totalorder %s35_s15, 3  ;;  %p208_p2 = scmp.lt.s32.totalorder %s623_s14, 4 }
   0x5   : > { %s701_s15 = smov (%p37_p1, %s35_s15), 0  ;;  %p209_p3 = pnand %p545_p0, %p208_p2 }
   0x6   : > { %p270_p4 = scmp.lt.s32.totalorder (!%p209_p3), %s615_s12, 2  ;;  %vm306_vm0 = vcmask (!%p209_p3), 261120   ;;  %v625_v0 = vmov (!%p209_p3), 0.0   ;;  %vm626_vm1 = vmmov (!%p209_p3), 0   ;;  %v311_v3 = vld [vmem:[%s694_s0] sm:$0xff] (!%p209_p3)  ;;  %v312_v4 = vld [vmem:[%s694_s0 + $0x8] sm:$0xff] (!%p209_p3) }
   0x7   : > { %212 = sbr.rel (%p209_p3) target bundleno = 254 (0xfe), region = 32  ;;  %565 = vmatprep.subr.bf16.mxu0 (!%p209_p3), %v625_v0  ;;  %569 = vmatprep.mubr.msk.bf16.mxu0 (!%p209_p3), %vm626_vm1, %v625_v0  ;;  %307 = vst.msk [vmem:[#allocation2] sm:$0xff] (!%p209_p3), %vm306_vm0, %v625_v0  ;;  %308 = vst.msk [vmem:[#allocation2 + $0x8] sm:$0xff] (!%p209_p3), %vm306_vm0, %v625_v0  ;;  %v313_v5 = vpack.c.bf16 (!%p209_p3), %v312_v4, %v311_v3  ;;  %vm401_vm2 = vcmask (!%p209_p3), 257024  }
   0xe   : > { %s703_s12 = smov (!%p270_p4, %s615_s12), 2  ;;  %v309_v6 = vld [vmem:[#allocation2] sm:$0xff]  ;;  %v310_v8 = vld [vmem:[#allocation2 + $0x8] sm:$0xff] }
   0xf   : > { %s558_s16 = sshll.u32 %s703_s12, 4  ;;  %s287_s26 = scalar_lea.vmem %s696_s2, %s703_s12 }
  0x10   : > { %s280_s19 = scalar_lea.vmem %s695_s1, %s558_s16  ;;  %v553_v14 = vld [vmem:[%s287_s26] ss:$0 sm:$0xff]  ;;  %s559_s27 = sshll.u32 %s703_s12, 3 }
  0x11   : > { %v599_v1 = vld [vmem:[%s280_s19] sm:$0xff]   ;;  %v600_v2 = vld [vmem:[%s280_s19 + $0x8] sm:$0xff]   ;;  %s299_s30 = scalar_lea.vmem %s697_s3, %s559_s27 }
  0x12   : > { %566 = vmatpush3.bf16.msra.mxu0 %v599_v1 }
  0x13   : > { %567 = vmatprep.subr.bf16.mxu0 %v625_v0 }
  0x16   : > { %568 = vmatpush3.bf16.msra.mxu0 %v600_v2 }
  0x19   : > { %570 = vmatmul.mubr.msk.bf16.vlgmr.msra.gmra.mrb[0].mxu0 %vm306_vm0, %v313_v5 }
  0xec   : > { %v368_v7 = vpop.f32.mrb[0].mxu0 }
  0xed   : > { %v375_v9 = vadd.f32 %v368_v7, %v309_v6  ;;  %v571_v10 = vpop.f32.mrb[1].mxu0 }
  0xee   : > { %v371_v11 = vpop.f32.mrb[2].mxu0 }
  0xef   : > { %377 = vst.msk [vmem:[#allocation2] sm:$0xff] %vm306_vm0, %v375_v9  ;;  %v376_v12 = vadd.f32 %v371_v11, %v310_v8  ;;  %v572_v13 = vpop.f32.mrb[3].mxu0 }
  0xf1   : > { %378 = vst.msk [vmem:[#allocation2 + $0x8] sm:$0xff] %vm306_vm0, %v376_v12 }
  0xf6   : > { %v382_v15 = vld [vmem:[#allocation2] sm:$0xff] }
  0xf7   : > { %v391_v16 = vadd.f32 %v553_v14, %v382_v15 }
  0xf8   : > { %v383_v17 = vld [vmem:[#allocation2 + $0x8] sm:$0xff] }
  0xf9   : > { %v560_v18 = vpack.c.bf16 %v391_v16, %v391_v16  ;;  %v392_v19 = vadd.f32 %v553_v14, %v383_v17 }
  0xfb   : > { %402 = vst.msk [vmem:[%s299_s30] sm:$0xf] %vm401_vm2, %v560_v18  ;;  %v561_v20 = vpack.c.bf16 %v392_v19, %v392_v19 }
  0xfd   : > { %403 = vst.msk [vmem:[%s299_s30 + $0x4] sm:$0xf] %vm401_vm2, %v561_v20 }
  0xfe PF: > { %s13_s14 = sadd.s32 1, %s623_s14   ;;  %s698_s12 = smov %s619_s13 }
  0xff   : > { %p10_p5 = scmp.ge.s32.totalorder %s13_s14, 5   ;;  %s699_s13 = smov %s701_s15 }
 0x101   :  { %12 = sbr.rel (!%p10_p5) target bundleno = 2 (0x2), region = 76 }

// kernel: encoder_layer_forward.6
= control target key start
LH: loop header
LB: loop body
LE: loop exit
PB: predicated region body
PF: predicated region fallthrough
CT: control target
= control target key end

     0   :  { %11 = vsyncpa [#allocation3], 0  ;;  %s1256_s0 = inlined_call_operand.vmem [shape: s32[2,1,8], index: 0, kind: input, shape index: {}]   ;;  %s1257_s1 = inlined_call_operand.vmem [shape: bf16[3,2,8,32], index: 1, kind: input, shape index: {}, may-alias: {1,2,3}]   ;;  %s1258_s2 = inlined_call_operand.vmem [shape: bf16[3,2,8,32], index: 2, kind: input, shape index: {}, may-alias: {1,2,3}]   ;;  %s1259_s3 = inlined_call_operand.vmem [shape: bf16[3,2,8,32], index: 3, kind: input, shape index: {}, may-alias: {1,2,3}]   ;;  %s1260_s4 = inlined_call_operand.vmem [shape: bf16[2,8,32], index: 4, kind: output, shape index: {0}]   ;;  %s1261_s5 = inlined_call_operand.hbm [shape: f32[2,2,8,8], index: 5, kind: output, shape index: {1}]  }
   0x1   :  { %13 = vsyncpa [#allocation3 + $0x1], 0  ;;  %s1081_s18 = smov 0   ;;  %s1083_s19 = smov 0  }
   0x2   :  { %s1085_s20 = smov 0   ;;  %s1087_s21 = smov 0  }
   0x3   :  { %s1089_s22 = smov 0   ;;  %s1091_s23 = smov 0  }
   0x4 LB: > { %s828_s24 = sadd.s32 4294967295, %s1040_s23   ;;  %s829_s25 = sadd.s32 4294967294, %s1040_s23   ;;  %s1040_s23 = sphi %s1091_s23, %s19_s23   ;;  %s1036_s22 = sphi %s1089_s22, %s1268_s22   ;;  %s1032_s21 = sphi %s1087_s21, %s1267_s21   ;;  %s1028_s20 = sphi %s1085_s20, %s1266_s20   ;;  %s1024_s19 = sphi %s1083_s19, %s1265_s19   ;;  %s1020_s18 = sphi %s1081_s18, %s1264_s18  }
   0x5   : > { %s38_s26 = sadd.s32 1, %s1036_s22  ;;  %s191_s27 = sadd.s32 1, %s1028_s20 }
   0x6   : > { %p40_p0 = scmp.ge.s32.totalorder %s38_s26, 2  ;;  %p201_p1 = scmp.ne.s32.totalorder %s1028_s20, %s1024_s19 }
   0x7   : > { %p202_p2 = scmp.eq.s32.totalorder %s828_s24, 1  ;;  %p207_p3 = scmp.ne.s32.totalorder %s1024_s19, %s1020_s18 }
   0x8   : > { %s1270_s26 = smov (%p40_p0, %s38_s26), 0  ;;  %p208_p5 = scmp.eq.s32.totalorder %s829_s25, 1 }
   0x9   : > { %p1121_p4 = por %p202_p2, %p201_p1  ;;  %s184_s29 = ssub.s32 %s1036_s22, %s1270_s26 }
   0xa   : > { %p832_p6 = scmp.ge.s32.totalorder %s1040_s23, 1  ;;  %p189_p7 = scmp.eq.s32.totalorder %s184_s29, 0 }
   0xb   : > { %p1128_p8 = por %p208_p5, %p207_p3  ;;  %p267_p9 = scmp.lt.s32.totalorder %s1040_s23, 3 }
   0xc   : > { %s1134_s6 = scalar_select %p189_p7, %s1028_s20, %s191_s27  }
   0xd   : > { %p268_p10 = pnand %p832_p6, %p267_p9 }
   0xe   : > { %p329_p11 = scmp.lt.s32.totalorder (!%p268_p10), %s1032_s21, 1  ;;  %v1042_v0 = vmov (!%p268_p10), 0.0   ;;  %vm1043_vm0 = vmmov (!%p268_p10), 0   ;;  %vm391_vm1 = vcmask (!%p268_p10), 130048   ;;  %v372_v4 = vlaneseq (!%p268_p10)  ;;  %s1046_s24 = smov (!%p268_p10), 112  }
   0xf   : > { %271 = sbr.rel (%p268_p10) target bundleno = 1433 (0x599), region = 36  ;;  %864 = vmatprep.subr.bf16.mxu0 (!%p268_p10), %v1042_v0  ;;  %866 = vmatprep.mubr.msk.bf16.mxu0 (!%p268_p10), %vm1043_vm0, %v1042_v0  ;;  %v1044_v8 = vmov (!%p268_p10), 0   ;;  %v1045_v12 = vmov (!%p268_p10), -1e+09   ;;  %vm438_vm6 = vcmask (!%p268_p10), 64512   ;;  %vm455_vm7 = vcmask (!%p268_p10), 1043456  }
  0x10   : > { %870 = vmatprep.subr.bf16.mxu1 (!%p268_p10), %v1042_v0  ;;  %872 = vmatprep.mubr.msk.bf16.mxu1 (!%p268_p10), %vm1043_vm0, %v1042_v0  ;;  %v373_v6 = vshrl.u32 (!%p268_p10), %v372_v4, 7  ;;  %v378_v10 = vand.u32 (!%p268_p10), 127, %v372_v4  ;;  %vm500_vm8 = vcmask (!%p268_p10), 125952  }
  0x12   : > { %v383_v7 = vsub.s32 (!%p268_p10), 0, %v373_v6  ;;  %vm379_vm3 = vcmp.le.s32.totalorder (!%p268_p10), %v378_v10, %v373_v6 }
  0x16   : > { %s330_s7 = scalar_select %p329_p11, %s1032_s21, 1 }
  0x18   : > { %s1144_s8 = sshll.u32 %s330_s7, 2  ;;  %s331_s17 = scalar_lea.vmem %s1256_s0, %s330_s7 }
  0x19   : > { %s739_s11 = scalar_lea.vmem %s1258_s2, %s1144_s8  ;;  %s341_s14 = scalar_lea.vmem %s1257_s1, %s1144_s8  ;;  %v370_v5 = vld [vmem:[%s331_s17] sm:$0x1] }
  0x1a   : > { %v838_v1 = vld [vmem:[%s739_s11 + $0x8] sm:$0xf]  ;;  %v388_v3 = vld [vmem:[%s341_s14] sm:$0xf]  ;;  %vm371_vm2 = vcmp.gt.s32.totalorder %v370_v5, 0  ;;  %s743_s29 = scalar_lea.vmem %s1259_s3, %s1144_s8  ;;  %s326_s7 = sand.u32 1, %s1024_s19  }
  0x1b   : > { %v396_v2 = vsel %vm391_vm1, %v838_v1, 0  ;;  %v380_v9 = vsel %vm371_vm2, 1, %v1044_v8  ;;  %v843_v20 = vcombine.low %v838_v1, %v838_v1  ;;  %v842_v21 = vcombine.low %v388_v3, %v388_v3  ;;  %v839_v27 = vld [vmem:[%s743_s29 + $0x10] sm:$0xf]  ;;  %s833_s9 = sshll.u32 %s326_s7, 4  ;;  %s1188_s13 = scalar_lea.vmem %s1260_s4, %s1144_s8 }
  0x1c   : > { %865 = vmatpush3.bf16.xpose.msra.mxu0 %v396_v2  ;;  %v384_v11 = vrot.slane %v380_v9, %v383_v7  ;;  %v457_v28 = vsel %vm455_vm7, %v839_v27, 0  ;;  %s1176_s10 = scalar_lea.vmem [#allocation2], %s833_s9  ;;  %v846_v47 = vcombine.low %v839_v27, %v839_v27  ;;  %s855_s8 = sshll.u32 %s1032_s21, 8 }
  0x1d   : > { %882 = vmatprep.subr.bf16.mxu0 %v1042_v0  ;;  %510 = vrot.lane.b32.xlu1 %v843_v20, %s1046_s24  ;;  %s662_s14 = sshll.u32 %s1176_s10, 4  ;;  %s1203_s17 = scalar_lea.hbm %s1261_s5, %s855_s8  ;;  %s1205_s14 = int_to_ptr.vmem [resolvable:$true] %s662_s14 }
  0x1e   : > { %vm385_vm4 = vcmp.eq.s32.totalorder %v384_v11, 1  ;;  %871 = vmatpush3.bf16.msra.mxu1 %v457_v28  ;;  %s962_s25 = scalar_lea.vmem %s1205_s14, 256  ;;  %s1047_s21 = smov [#allocation2]  }
  0x1f   : > { %vm386_vm5 = vmand %vm385_vm4, %vm379_vm3  ;;  %876 = vmatprep.subr.bf16.mxu1 %v1042_v0  ;;  %p963_p12 = scmp.ne.s32.totalorder %s1205_s14, %s962_s25  ;;  %s966_s27 = sshll.u32 %s1047_s21, 4  ;;  %s967_s27 = int_to_ptr.vmem [resolvable:$false] %s966_s27 }
  0x20   : > { %v387_v13 = vsel %vm386_vm5, 0.0, %v1045_v12  ;;  %s968_s29 = scalar_lea.vmem %s967_s27, 512  ;;  %p969_p1 = scmp.lt.s32.totalorder %s1205_s14, %s967_s27 }
  0x21   : > { %505 = vrot.lane.b32.xlu1 %v842_v21, %s1046_s24  ;;  %p964_p13 = pnand %p963_p12, %p1121_p4  ;;  %p970_p2 = scmp.lt.s32.totalorder %s968_s29, %s962_s25 }
  0x23   : > { %867 = vmatmul.mubr.msk.bf16.vlgmr.msra.gmra.mrb[0].mxu0 %vm391_vm1, %v388_v3  ;;  %p965_p0 = pneg %p964_p13  ;;  %p971_p3 = por %p970_p2, %p969_p1 }
  0x24   : > { %884 = vmatprep.mubr.msk.bf16.mxu0 %vm1043_vm0, %v1042_v0 }
  0x25   : > { %p972_p5 = pnand %p971_p3, %p965_p0 }
  0x8f   : > { %v511_v31 = vpop.permute.xlu1 %510 }
  0x90   : > { %v516_v33 = vsel %vm391_vm1, %v511_v31, 0 }
  0x93   : > { %v506_v35 = vpop.permute.xlu1 %505 }
  0xf6   : > { %v432_v14 = vpop.f32.mrb[0].mxu0 }
  0xf7   : > { %v433_v15 = vadd.f32 %v432_v14, %v387_v13  ;;  %v868_v16 = vpop.f32.mrb[1].mxu0 }
  0xf8   : > { %v435_v17 = vpop.f32.mrb[2].mxu0 }
  0xf9   : > { %v869_v18 = vpop.f32.mrb[3].mxu0  ;;  %v439_v19 = vsel %vm438_vm6, %v433_v15, -inf }
  0xfa   : > { %440 = vmax.xlane.f32.xlu0 %v439_v19 }
 0x187   : > { %v441_v22 = vpop.xlane.xlu0 %440 }
 0x188   : > { %v442_v23 = vsub.f32 %v433_v15, %v441_v22 }
 0x18a   : > { %v443_v24 = vmul.f32 1.442695, %v442_v23 }
 0x18c   : > { %954 = vpow2.f32 %v443_v24 }
 0x196   : > { %v955_v25 = vpop.eup %954 }
 0x197   : > { %v445_v26 = vsel %vm438_vm6, %v955_v25, 0.0 }
 0x198   : > { %446 = vadd.xlane.f32.xlu0 %v445_v26 }
 0x225   : > { %v447_v29 = vpop.xlane.xlu0 %446 }
 0x226   : > { %956 = vrcp.f32 %v447_v29 }
 0x230   : > { %v957_v30 = vpop.eup %956 }
 0x231   : > { %v449_v32 = vmul.f32 %v957_v30, %v955_v25 }
 0x233   : > { %v451_v34 = vpack.c.bf16 %v449_v32, %v449_v32  ;;  %450 = vst.msk [vmem:[%s1176_s10] sm:$0xff] %vm438_vm6, %v449_v32 }
 0x235   : > { %873 = vmatmul.mubr.msk.bf16.vlgmr.msra.gmra.mrb[0].mxu1 %vm438_vm6, %v451_v34 }
 0x236   : > { %877 = vmatpush3.bf16.xpose.msra.mxu1 %v516_v33  ;;  %878 = vmatprep.mubr.msk.bf16.mxu1 %vm1043_vm0, %v1042_v0 }
 0x23d   : > { %879 = vmatmul.mubr.msk.bf16.vlgmr.msra.gmra.mrb[4].mxu1 %vm391_vm1, %v506_v35 }
 0x308   : > { %v493_v36 = vpop.f32.mrb[0].mxu1 }
 0x309   : > { %v499_v37 = vpack.c.bf16 %v493_v36, %v493_v36  ;;  %v874_v38 = vpop.f32.mrb[1].mxu1 }
 0x30a   : > { %v496_v39 = vpop.f32.mrb[2].mxu1 }
 0x30b   : > { %501 = vst.msk [vmem:[%s1188_s13] sm:$0xf] %vm500_vm8, %v499_v37  ;;  %v875_v40 = vpop.f32.mrb[3].mxu1 }
 0x310   : > { %v552_v41 = vpop.f32.mrb[4].mxu1 }
 0x311   : > { %v553_v42 = vadd.f32 %v552_v41, %v387_v13  ;;  %v880_v43 = vpop.f32.mrb[5].mxu1 }
 0x312   : > { %v555_v44 = vpop.f32.mrb[6].mxu1 }
 0x313   : > { %v881_v45 = vpop.f32.mrb[7].mxu1  ;;  %v558_v46 = vsel %vm438_vm6, %v553_v42, -inf }
 0x314   : > { %559 = vmax.xlane.f32.xlu0 %v558_v46 }
 0x32a   : > { %575 = vrot.lane.b32.xlu0 %v846_v47, %s1046_s24  ;;  %s1209_s24 = scalar_lea.sflag [#allocation3], %s326_s7 }
 0x3a1   : > { %v560_v48 = vpop.xlane.xlu0 %559 }
 0x3a2   : > { %v561_v49 = vsub.f32 %v553_v42, %v560_v48 }
 0x3a4   : > { %v562_v50 = vmul.f32 1.442695, %v561_v49 }
 0x3a5   : > { %v576_v53 = vpop.permute.xlu0 %575 }
 0x3a6   : > { %958 = vpow2.f32 %v562_v50  ;;  %v581_v54 = vsel %vm455_vm7, %v576_v53, 0 }
 0x3a7   : > { %883 = vmatpush3.bf16.msra.mxu0 %v581_v54 }
 0x3b0   : > { %v959_v51 = vpop.eup %958 }
 0x3b1   : > { %v564_v52 = vsel %vm438_vm6, %v959_v51, 0.0 }
 0x3b2   : > { %565 = vadd.xlane.f32.xlu1 %v564_v52 }
 0x43f   : > { %v566_v55 = vpop.xlane.xlu1 %565 }
 0x440   : > { %960 = vrcp.f32 %v566_v55 }
 0x44a   : > { %v961_v56 = vpop.eup %960 }
 0x44b   : > { %v568_v57 = vmul.f32 %v961_v56, %v959_v51 }
 0x44d   : > { %v571_v58 = vpack.c.bf16 %v568_v57, %v568_v57  ;;  %845 = vst.msk [vmem:[%s1176_s10 + $0x8] sm:$0xff] %vm438_vm6, %v568_v57 }
 0x44f   : > { %885 = vmatmul.mubr.msk.bf16.vlgmr.msra.gmra.mrb[4].mxu0 %vm438_vm6, %v571_v58 }
 0x450   : > { %975 = shalt.err (!%p972_p5)
}
 0x451   : > { %s976_s7 = scalar_lea.hbm %s1203_s17, 256  ;;  %s980_s11 = scalar_lea.hbm %s1261_s5, 512 }
 0x452   : > { %p977_p6 = scmp.ne.s32.totalorder %s1203_s17, %s976_s7  ;;  %p981_p10 = scmp.lt.u32.totalorder %s1203_s17, %s1261_s5 }
 0x453   : > { %p982_p11 = scmp.lt.u32.totalorder %s980_s11, %s976_s7  ;;  %p984_p13 = scmp.lt.u32.totalorder %s976_s7, %s1203_s17 }
 0x454   : > { %p978_p7 = pnand %p977_p6, %p1121_p4 }
 0x455   : > { %p983_p12 = por %p982_p11, %p981_p10 }
 0x456   : > { %p979_p9 = pneg %p978_p7 }
 0x457   : > { %p985_p0 = por %p984_p13, %p983_p12 }
 0x459   : > { %p986_p1 = pnand %p985_p0, %p979_p9 }
 0x45b   : > { %989 = shalt.err (!%p986_p1)
}
 0x45c   : > { %s1048_s15 = smov 128   ;;  %s1049_s16 = smov 8   ;;  %vm630_vm9 = vcmask 257152  }
 0x45d   : > { %888 = dma.vmem_to_hbm [thread:$0]  (%p1121_p4), %s1205_s14, 256, %s1203_s17, %s1209_s24, %s1048_s15, %s1048_s15, %s1049_s16  }
 0x45e   : > { %s1050_s25 = smov 16  }
 0x522   : > { %v617_v59 = vpop.f32.mrb[4].mxu0 }
 0x523   : > { %v854_v60 = vpack.c.bf16 %v617_v59, %v617_v59  ;;  %v886_v61 = vpop.f32.mrb[5].mxu0 }
 0x524   : > { %v620_v62 = vpop.f32.mrb[6].mxu0 }
 0x525   : > { %627 = vrot.lane.b32.xlu0 %v854_v60, %s1050_s25  ;;  %v887_v63 = vpop.f32.mrb[7].mxu0 }
 0x597   : > { %v628_v0 = vpop.permute.xlu0 %627 }
 0x598   : > { %631 = vst.msk [vmem:[%s1188_s13] sm:$0xf] %vm630_vm9, %v628_v0 }
 0x599 PF: > { %p894_p2 = scmp.ge.s32.totalorder %s1040_s23, 2  ;;  %s690_s21 = sand.u32 1, %s1020_s18  }
 0x59a   : > { %s691_s28 = scalar_lea.sflag [#allocation3], %s690_s21 }
 0x59b   : > { %p891_p3 = pnand %p894_p2, %p1128_p8 }
 0x59d   : > { %1015 = dma.done.wait (!%p891_p3), %s691_s28, 256  }
 0x59e   : > { %1017 = vsyncadd (!%p891_p3), %s691_s28, 4294967040  ;;  %s19_s23 = sadd.s32 1, %s1040_s23   ;;  %s1264_s18 = smov %s1024_s19 }
 0x59f   : > { %p16_p4 = scmp.ge.s32.totalorder %s19_s23, 4   ;;  %s1265_s19 = smov %s1028_s20 }
 0x5a0   : > { %s1266_s20 = smov %s1134_s6  ;;  %s1267_s21 = smov %s1036_s22 }
 0x5a1   : > { %s1268_s22 = smov %s1270_s26  ;;  %18 = sbr.rel (!%p16_p4) target bundleno = 4 (0x4), region = 93 }
 0x5a8   :  { %696 = vsyncpa [#allocation3], 1 }
 0x5a9   :  { %698 = vsyncpa [#allocation3 + $0x1], 1 }

// kernel: encoder_layer_forward.8
= control target key start
LH: loop header
LB: loop body
LE: loop exit
PB: predicated region body
PF: predicated region fallthrough
CT: control target
= control target key end

     0   :  { %vm19_vm0 = vcmask 523264   ;;  %v147_v0 = vmov 0.0   ;;  %vm148_vm1 = vmmov 0   ;;  %vm43_vm2 = vcmask 261120   ;;  %s194_s1 = inlined_call_operand.vmem [shape: bf16[32,64], index: 1, kind: input, shape index: {}]   ;;  %s195_s0 = inlined_call_operand.vmem [shape: f32[16,32], index: 0, kind: input, shape index: {}]   ;;  %s196_s2 = inlined_call_operand.vmem [shape: f32[1,64], index: 2, kind: input, shape index: {}]   ;;  %s197_s3 = inlined_call_operand.vmem [shape: bf16[16,64], index: 3, kind: output, shape index: {}]  }
   0x1   :  { %135 = vmatprep.subr.bf16.mxu0 %v147_v0  ;;  %v145_v1 = vld [vmem:[%s194_s1] sm:$0xff]   ;;  %139 = vmatprep.mubr.msk.bf16.mxu0 %vm148_vm1, %v147_v0  ;;  %20 = vst.msk [vmem:[#allocation2] sm:$0xff] %vm19_vm0, %v147_v0  ;;  %21 = vst.msk [vmem:[#allocation2 + $0x8] sm:$0xff] %vm19_vm0, %v147_v0  ;;  %v146_v2 = vld [vmem:[%s194_s1 + $0x8] sm:$0xff]   ;;  %vm117_vm3 = vcmask 519168  }
   0x2   :  { %136 = vmatpush3.bf16.msra.mxu0 %v145_v1  ;;  %v24_v3 = vld [vmem:[%s195_s0] sm:$0xff]  ;;  %v25_v4 = vld [vmem:[%s195_s0 + $0x8] sm:$0xff] }
   0x3   :  { %137 = vmatprep.subr.bf16.mxu0 %v147_v0  ;;  %v26_v5 = vpack.c.bf16 %v25_v4, %v24_v3  ;;  %v127_v14 = vld [vmem:[%s196_s2] ss:$0 sm:$0xff] }
   0x6   :  { %138 = vmatpush3.bf16.msra.mxu0 %v146_v2 }
   0x8   :  { %v22_v6 = vld [vmem:[#allocation2] sm:$0xff]  ;;  %v23_v8 = vld [vmem:[#allocation2 + $0x8] sm:$0xff] }
   0x9   :  { %140 = vmatmul.mubr.msk.bf16.vlgmr.msra.gmra.mrb[0].mxu0 %vm43_vm2, %v26_v5 }
  0xdc   :  { %v81_v7 = vpop.f32.mrb[0].mxu0 }
  0xdd   :  { %v88_v9 = vadd.f32 %v81_v7, %v22_v6  ;;  %v141_v10 = vpop.f32.mrb[1].mxu0 }
  0xde   :  { %v84_v11 = vpop.f32.mrb[2].mxu0 }
  0xdf   :  { %91 = vst.msk [vmem:[#allocation2] sm:$0xff] %vm19_vm0, %v88_v9  ;;  %v89_v12 = vadd.f32 %v84_v11, %v23_v8  ;;  %v142_v13 = vpop.f32.mrb[3].mxu0 }
  0xe1   :  { %92 = vst.msk [vmem:[#allocation2 + $0x8] sm:$0xff] %vm19_vm0, %v89_v12 }
  0xe6   :  { %v96_v15 = vld [vmem:[#allocation2] sm:$0xff] }
  0xe7   :  { %v105_v16 = vadd.f32 %v127_v14, %v96_v15 }
  0xe8   :  { %v97_v17 = vld [vmem:[#allocation2 + $0x8] sm:$0xff] }
  0xe9   :  { %v107_v18 = vmax.f32 %v105_v16, 0.0  ;;  %v106_v19 = vadd.f32 %v127_v14, %v97_v17 }
  0xeb   :  { %v130_v20 = vpack.c.bf16 %v107_v18, %v107_v18  ;;  %v108_v21 = vmax.f32 %v106_v19, 0.0 }
  0xed   :  { %118 = vst.msk [vmem:[%s197_s3] sm:$0xf] %vm117_vm3, %v130_v20  ;;  %v131_v22 = vpack.c.bf16 %v108_v21, %v108_v21 }
  0xef   :  { %119 = vst.msk [vmem:[%s197_s3 + $0x4] sm:$0xf] %vm117_vm3, %v131_v22 }

// kernel: encoder_layer_forward.9
= control target key start
LH: loop header
LB: loop body
LE: loop exit
PB: predicated region body
PF: predicated region fallthrough
CT: control target
= control target key end

     0   :  { %v274_v1 = vmov 0.0   ;;  %vm275_vm0 = vmmov 0   ;;  %vm29_vm1 = vcmask 261120   ;;  %s366_s0 = inlined_call_operand.vmem [shape: bf16[16,64], index: 0, kind: input, shape index: {}]   ;;  %s367_s1 = inlined_call_operand.vmem [shape: bf16[64,32], index: 1, kind: input, shape index: {}]   ;;  %s368_s2 = inlined_call_operand.vmem [shape: f32[1,32], index: 2, kind: input, shape index: {}]   ;;  %s369_s3 = inlined_call_operand.vmem [shape: f32[16,32], index: 3, kind: input, shape index: {}]   ;;  %s370_s4 = inlined_call_operand.vmem [shape: f32[1,32], index: 4, kind: input, shape index: {}]   ;;  %s371_s5 = inlined_call_operand.vmem [shape: f32[1,32], index: 5, kind: input, shape index: {}]   ;;  %s372_s6 = inlined_call_operand.hbm [shape: f32[16,32], index: 6, kind: output, shape index: {}]  }
   0x1   :  { %v241_v0 = vld [vmem:[%s367_s1] sm:$0xff]   ;;  %224 = vmatprep.subr.bf16.mxu0 %v274_v1  ;;  %v242_v2 = vld [vmem:[%s367_s1 + $0x8] sm:$0xff]   ;;  %232 = vmatprep.mubr.msk.bf16.mxu0 %vm275_vm0, %v274_v1  ;;  %30 = vst.msk [vmem:[#allocation2] sm:$0xff] %vm29_vm1, %v274_v1  ;;  %31 = vst.msk [vmem:[#allocation2 + $0x8] sm:$0xff] %vm29_vm1, %v274_v1 }
   0x2   :  { %225 = vmatpush3.bf16.msra.mxu0 %v241_v0 }
   0x3   :  { %226 = vmatprep.subr.bf16.mxu0 %v274_v1 }
   0x4   :  { %11 = vsyncpa [#allocation4], 0  ;;  %v243_v3 = vld [vmem:[%s367_s1 + $0x10] sm:$0xff]   ;;  %v244_v4 = vld [vmem:[%s367_s1 + $0x18] sm:$0xff]   ;;  %vm73_vm2 = vcmask 523264   ;;  %s276_s13 = smov [#allocation3]  }
   0x5   :  { %v245_v5 = vld [vmem:[%s366_s0] sm:$0xff]   ;;  %v138_v19 = vld [vmem:[%s369_s3 + $0x8] sm:$0xff]  ;;  %s199_s14 = sshll.u32 %s276_s13, 4  ;;  %s200_s14 = int_to_ptr.vmem [resolvable:$true] %s199_s14 }
   0x6   :  { %227 = vmatpush3.bf16.msra.mxu0 %v242_v2  ;;  %v216_v14 = vld [vmem:[%s368_s2] ss:$0 sm:$0xff]  ;;  %p255_p1 = scmp.lt.s32.totalorder %s200_s14, %s200_s14 }
   0x7   :  { %228 = vmatprep.subr.bf16.mxu0 %v274_v1  ;;  %v137_v16 = vld [vmem:[%s369_s3] sm:$0xff] }
   0x8   :  { %v32_v6 = vld [vmem:[#allocation2] sm:$0xff]  ;;  %v33_v8 = vld [vmem:[#allocation2 + $0x8] sm:$0xff] }
   0x9   :  { %v217_v47 = vld [vmem:[%s370_s4] ss:$0 sm:$0xff]  ;;  %s250_s4 = scalar_lea.vmem %s200_s14, 256 }
   0xa   :  { %229 = vmatpush3.bf16.msra.mxu0 %v243_v3  ;;  %v218_v49 = vld [vmem:[%s371_s5] ss:$0 sm:$0xff]  ;;  %p251_p0 = scmp.ne.s32.totalorder %s200_s14, %s250_s4  ;;  %p256_p2 = scmp.lt.s32.totalorder %s250_s4, %s250_s4 }
   0xb   :  { %230 = vmatprep.subr.bf16.mxu0 %v274_v1 }
   0xc   :  { %p257_p3 = por %p256_p2, %p255_p1 }
   0xe   :  { %231 = vmatpush3.bf16.msra.mxu0 %v244_v4  ;;  %p258_p4 = pnand %p257_p3, %p251_p0 }
  0x11   :  { %233 = vmatmul.mubr.msk.bf16.vlgmr.msra.gmra.mrb[0].mxu0 %vm73_vm2, %v245_v5 }
  0xe4   :  { %v111_v7 = vpop.f32.mrb[0].mxu0 }
  0xe5   :  { %v118_v9 = vadd.f32 %v111_v7, %v32_v6  ;;  %v234_v10 = vpop.f32.mrb[1].mxu0 }
  0xe6   :  { %v114_v11 = vpop.f32.mrb[2].mxu0 }
  0xe7   :  { %121 = vst.msk [vmem:[#allocation2] sm:$0xff] %vm29_vm1, %v118_v9  ;;  %v119_v12 = vadd.f32 %v114_v11, %v33_v8  ;;  %v235_v13 = vpop.f32.mrb[3].mxu0 }
  0xe9   :  { %122 = vst.msk [vmem:[#allocation2 + $0x8] sm:$0xff] %vm29_vm1, %v119_v12 }
  0xee   :  { %v126_v15 = vld [vmem:[#allocation2] sm:$0xff] }
  0xef   :  { %v135_v17 = vadd.f32 %v216_v14, %v126_v15 }
  0xf0   :  { %v127_v18 = vld [vmem:[#allocation2 + $0x8] sm:$0xff] }
  0xf1   :  { %v139_v20 = vadd.f32 %v137_v16, %v135_v17  ;;  %v136_v21 = vadd.f32 %v216_v14, %v127_v18 }
  0xf3   :  { %v141_v22 = vsel %vm29_vm1, %v139_v20, 0.0  ;;  %v150_v23 = vmul.f32 %v139_v20, %v139_v20  ;;  %v140_v24 = vadd.f32 %v138_v19, %v136_v21 }
  0xf4   :  { %142 = vadd.xlane.f32.xlu0 %v141_v22 }
  0xf5   :  { %v152_v25 = vsel %vm29_vm1, %v150_v23, 0.0  ;;  %v151_v26 = vmul.f32 %v140_v24, %v140_v24  ;;  %v144_v27 = vsel %vm29_vm1, %v140_v24, 0.0 }
  0xf6   :  { %153 = vadd.xlane.f32.xlu1 %v152_v25 }
  0xf7   :  { %v155_v28 = vsel %vm29_vm1, %v151_v26, 0.0 }
  0xf8   :  { %145 = vadd.xlane.f32.xlu0 %v144_v27 }
  0xfa   :  { %156 = vadd.xlane.f32.xlu1 %v155_v28 }
 0x181   :  { %v143_v29 = vpop.xlane.xlu0 %142 }
 0x182   :  { %v148_v30 = vmul.f32 0.03125, %v143_v29 }
 0x183   :  { %v154_v31 = vpop.xlane.xlu1 %153 }
 0x184   :  { %v160_v32 = vmul.f32 %v148_v30, %v148_v30  ;;  %v158_v33 = vmul.f32 0.03125, %v154_v31  ;;  %v166_v45 = vsub.f32 %v139_v20, %v148_v30 }
 0x185   :  { %v146_v34 = vpop.xlane.xlu0 %145 }
 0x186   :  { %v162_v35 = vsub.f32 %v158_v33, %v160_v32  ;;  %v149_v36 = vmul.f32 0.03125, %v146_v34 }
 0x187   :  { %v157_v37 = vpop.xlane.xlu1 %156 }
 0x188   :  { %v164_v38 = vmax.f32 %v162_v35, 0.0  ;;  %v161_v39 = vmul.f32 %v149_v36, %v149_v36  ;;  %v159_v40 = vmul.f32 0.03125, %v157_v37  ;;  %v167_v50 = vsub.f32 %v140_v24, %v149_v36 }
 0x18a   :  { %v168_v41 = vadd.f32 1e-05, %v164_v38  ;;  %v163_v42 = vsub.f32 %v159_v40, %v161_v39 }
 0x18c   :  { %246 = vrsqrt.f32 %v168_v41  ;;  %v165_v43 = vmax.f32 %v163_v42, 0.0 }
 0x18e   :  { %v169_v44 = vadd.f32 1e-05, %v165_v43 }
 0x190   :  { %248 = vrsqrt.f32 %v169_v44 }
 0x196   :  { %v247_v46 = vpop.eup %246 }
 0x197   :  { %v172_v48 = vmul.f32 %v247_v46, %v166_v45 }
 0x199   :  { %v181_v51 = vmul.f32 %v217_v47, %v172_v48 }
 0x19a   :  { %v249_v52 = vpop.eup %248 }
 0x19b   :  { %v173_v53 = vmul.f32 %v249_v52, %v167_v50  ;;  %v190_v54 = vadd.f32 %v218_v49, %v181_v51 }
 0x19d   :  { %v182_v55 = vmul.f32 %v217_v47, %v173_v53  ;;  %192 = vst.msk [vmem:[#allocation3] sm:$0xff] %vm29_vm1, %v190_v54 }
 0x19f   :  { %v191_v56 = vadd.f32 %v218_v49, %v182_v55 }
 0x1a1   :  { %193 = vst.msk [vmem:[#allocation3 + $0x8] sm:$0xff] %vm29_vm1, %v191_v56 }
 0x1a2   :  { %261 = shalt.err (!%p258_p4)
}
 0x1a3   :  { %s262_s16 = scalar_lea.hbm %s372_s6, 256 }
 0x1a4   :  { %p263_p5 = scmp.ne.s32.totalorder %s372_s6, %s262_s16  ;;  %p266_p6 = scmp.lt.u32.totalorder %s262_s16, %s372_s6 }
 0x1a6   :  { %p268_p7 = pnand %p266_p6, %p263_p5 }
 0x1a8   :  { %271 = shalt.err (!%p268_p7)
}
 0x1a9   :  { %s277_s21 = smov 128   ;;  %s278_s22 = smov 8  }
 0x1aa   :  { %205 = dma.vmem_to_hbm [thread:$0]  %s200_s14, 256, %s372_s6, [#allocation4], %s277_s21, %s277_s21, %s278_s22  }
 0x1ab   :  { %272 = dma.done.wait [#allocation4], 256  }
 0x1ac   :  { %273 = vsyncadd [#allocation4], 4294967040 }
 0x1ad   :  { %209 = vsyncpa [#allocation4], 1 }

</bundles_post_ra>
